<compile_context>
chip_gen: v7x
topology: tpu7x:2x2x1
jax: 0.10.0
libtpu: 0.0.40
codegen_flags: <defaults>
</compile_context>

<pallas_src>
import functools

import numpy as np

import jax
import jax.numpy as jnp
from jax.experimental import pallas as pl
from jax.experimental.pallas import tpu as pltpu

EPS = 1e-5  # BatchNorm eps (PyTorch default)


# --------------------------------------------------------------------------
# Wrapper-side (one-time) preparation of the banded conv / pooling / upsample
# matrices.  All of these are tiny (<= 160x192 floats) and are built once per
# parameter set with plain numpy.
# --------------------------------------------------------------------------

def _conv_row_matrices(w, b, w_in, *, cols="wmajor", upsample=False):
    """Banded matrices for a 3x3 VALID conv acting on (H, W_in*Cin) rows.

    Returns m (3, W_in*Cin, W_out*Cout) and bias (1, W_out*Cout) such that
        out[ho, col(wo, cout)] = sum_dy  x[ho+dy, :] @ m[dy]  + bias
    cols:
      "wmajor": col = wo*Cout + cout                 (standard)
      "parity": even-wo block first, then odd block  (for fused 2x2 h-pool)
      "cmajor": col = cout*W_out + wo                (for channel softmax)
    upsample=True additionally duplicates every output column horizontally
    (nearest-neighbour 2x in W folded into the matmul).
    """
    cout, cin, kh, kw = w.shape
    wo_n = w_in - 2
    w_out = 2 * wo_n if upsample else wo_n
    if cols == "parity":
        assert wo_n % 2 == 0, "parity layout needs an even conv output width"
        col = lambda wo, co: (wo % 2) * (wo_n // 2) * cout + (wo // 2) * cout + co
    elif cols == "cmajor":
        col = lambda wo, co: co * w_out + wo
    else:
        col = lambda wo, co: wo * cout + co

    m = np.zeros((kh, w_in * cin, w_out * cout), np.float32)
    bias = np.zeros((1, w_out * cout), np.float32)
    for wo_out in range(w_out):
        wsrc = wo_out // 2 if upsample else wo_out
        for co in range(cout):
            j = col(wo_out, co)
            bias[0, j] = b[co]
            for dy in range(kh):
                for dx in range(kw):
                    for ci in range(cin):
                        m[dy, (wsrc + dx) * cin + ci, j] = w[co, ci, dy, dx]
    return m, bias


def _pool_row_select(h):
    """0/1 matrices selecting even / odd source rows (vertical 2x2 pool)."""
    hp = h // 2
    de = np.zeros((hp, h), np.float32)
    do = np.zeros((hp, h), np.float32)
    de[np.arange(hp), 2 * np.arange(hp)] = 1.0
    do[np.arange(hp), 2 * np.arange(hp) + 1] = 1.0
    return de, do


def _upsample_rows(h):
    """0/1 matrix duplicating each source row (vertical nearest 2x)."""
    e = np.zeros((2 * h, h), np.float32)
    e[np.arange(2 * h), np.arange(2 * h) // 2] = 1.0
    return e


def prepare_operands(params, h_in, w_in):
    """Builds all constant kernel operands + the static size dictionary."""
    f = lambda a: np.asarray(a, np.float32)
    w1, b1 = map(f, params["conv1"])
    w2, b2 = map(f, params["conv2"])
    w3, b3 = map(f, params["conv3"])
    w4, b4 = map(f, params["conv4"])
    w5, b5 = map(f, params["conv5"])
    g1, be1, mu1, v1 = map(f, params["bn1"])
    g2, be2, mu2, v2 = map(f, params["bn2"])

    # Fold eval-mode BatchNorm (pool -> bn -> next conv) exactly into the
    # next conv's weights / bias.
    s1 = g1 / np.sqrt(v1 + EPS)
    t1 = be1 - mu1 * s1
    s2 = g2 / np.sqrt(v2 + EPS)
    t2 = be2 - mu2 * s2
    w2f = w2 * s1[None, :, None, None]
    b2f = b2 + w2.sum(axis=(2, 3)) @ t1
    w3f = w3 * s2[None, :, None, None]
    b3f = b3 + w3.sum(axis=(2, 3)) @ t2

    # Spatial size chain.
    h1, wd1 = h_in - 2, w_in - 2        # conv1
    hp1, wp1 = h1 // 2, wd1 // 2        # pool1
    h2, wd2 = hp1 - 2, wp1 - 2          # conv2
    hp2, wp2 = h2 // 2, wd2 // 2        # pool2
    h3, wd3 = hp2 - 2, wp2 - 2          # conv3
    hu1, wu1 = 2 * h3, 2 * wd3          # upsample1
    h4, wd4 = hu1 - 2, wu1 - 2          # conv4
    hu2, wu2 = 2 * h4, 2 * wd4          # upsample2
    h5, wd5 = hu2 - 2, wu2 - 2          # conv5

    m1, r1 = _conv_row_matrices(w1, b1, w_in, cols="parity")
    m2, r2 = _conv_row_matrices(w2f, b2f, wp1, cols="parity")
    m3, r3 = _conv_row_matrices(w3f, b3f, wp2, upsample=True)
    m4, r4 = _conv_row_matrices(w4, b4, wu1, upsample=True)
    m5, r5 = _conv_row_matrices(w5, b5, wu2, cols="cmajor")
    d1e, d1o = _pool_row_select(h1)
    d2e, d2o = _pool_row_select(h2)
    e1 = _upsample_rows(h3)
    e2 = _upsample_rows(h4)

    dims = dict(h_in=h_in, w_in=w_in,
                h1=h1, half1=(wd1 // 2) * w1.shape[0],
                h2=h2, half2=(wd2 // 2) * w2.shape[0],
                h3=h3, h4=h4, h5=h5, w5=wd5)

    ops = tuple(jnp.asarray(a) for a in
                (m1, r1, d1e, d1o,
                 m2, r2, d2e, d2o,
                 m3, r3, e1,
                 m4, r4, e2,
                 m5, r5))
    return ops, dims


# --------------------------------------------------------------------------
# The single fused Pallas kernel (one grid step == one image).
# --------------------------------------------------------------------------

def _cae_kernel(x_ref,
                m1_ref, r1_ref, d1e_ref, d1o_ref,
                m2_ref, r2_ref, d2e_ref, d2o_ref,
                m3_ref, r3_ref, e1_ref,
                m4_ref, r4_ref, e2_ref,
                m5_ref, r5_ref,
                out_ref, *, dims):
    f32 = jnp.float32

    def conv3taps(x, m_ref, r_ref, n_rows):
        # 3x3 valid conv as three banded matmuls over row-shifted slabs.
        acc = jnp.dot(x[0:n_rows, :], m_ref[0], preferred_element_type=f32)
        acc = acc + jnp.dot(x[1:n_rows + 1, :], m_ref[1], preferred_element_type=f32)
        acc = acc + jnp.dot(x[2:n_rows + 2, :], m_ref[2], preferred_element_type=f32)
        return acc + r_ref[...]

    def pool2x2(q, de_ref, do_ref, half):
        # Horizontal max over the parity-ordered lane halves, then vertical
        # max + row decimation via two 0/1 selection matmuls.
        h = jnp.maximum(q[:, :half], q[:, half:])
        return jnp.maximum(
            jnp.dot(de_ref[...], h, preferred_element_type=f32),
            jnp.dot(do_ref[...], h, preferred_element_type=f32))

    x = x_ref[0]                                            # (h_in, w_in*3)

    # conv1 + ReLU + 2x2 max-pool  (bn1 folded into conv2's weights)
    q = jnp.maximum(conv3taps(x, m1_ref, r1_ref, dims["h1"]), 0.0)
    p = pool2x2(q, d1e_ref, d1o_ref, dims["half1"])         # (hp1, wp1*8)

    # conv2 + ReLU + 2x2 max-pool  (bn2 folded into conv3's weights)
    q = jnp.maximum(conv3taps(p, m2_ref, r2_ref, dims["h2"]), 0.0)
    p = pool2x2(q, d2e_ref, d2o_ref, dims["half2"])         # (hp2, wp2*12)

    # conv3 + ReLU; horizontal nearest-2x folded into the columns of m3,
    # vertical nearest-2x as a row-duplication matmul.
    q = jnp.maximum(conv3taps(p, m3_ref, r3_ref, dims["h3"]), 0.0)
    u = jnp.dot(e1_ref[...], q, preferred_element_type=f32)  # (2*h3, 2*w3*16)

    # conv4 + ReLU + nearest-2x upsample (same trick)
    q = jnp.maximum(conv3taps(u, m4_ref, r4_ref, dims["h4"]), 0.0)
    u = jnp.dot(e2_ref[...], q, preferred_element_type=f32)  # (2*h4, 2*w4*12)

    # conv5 (channel-major output columns) + channel softmax, stored as NCHW.
    q = conv3taps(u, m5_ref, r5_ref, dims["h5"])             # (h5, 3*w5)
    w5 = dims["w5"]
    x0 = q[:, 0 * w5:1 * w5]
    x1 = q[:, 1 * w5:2 * w5]
    x2 = q[:, 2 * w5:3 * w5]
    mx = jnp.maximum(jnp.maximum(x0, x1), x2)
    ea = jnp.exp(x0 - mx)
    eb = jnp.exp(x1 - mx)
    ec = jnp.exp(x2 - mx)
    inv = 1.0 / (ea + eb + ec)
    out_ref[0, 0, :, :] = (ea * inv).astype(out_ref.dtype)
    out_ref[0, 1, :, :] = (eb * inv).astype(out_ref.dtype)
    out_ref[0, 2, :, :] = (ec * inv).astype(out_ref.dtype)


def cae_forward(x_nchw, ops, *, dims):
    """Full ConvAutoEncoder forward.  x_nchw: (B, 3, H, W) -> (B, 3, h5, w5)."""
    B, c_in = x_nchw.shape[0], x_nchw.shape[1]
    h_in, w_in = dims["h_in"], dims["w_in"]

    # NCHW -> per-image row layout (rows = H, lanes = W*C).  Cheap glue.
    x_rows = jnp.transpose(x_nchw, (0, 2, 3, 1)).reshape(B, h_in, w_in * c_in)

    def const_spec(shape):
        nd = len(shape)
        return pl.BlockSpec(shape, lambda b, _nd=nd: (0,) * _nd)

    in_specs = [pl.BlockSpec((1, h_in, w_in * c_in), lambda b: (b, 0, 0))]
    in_specs += [const_spec(tuple(o.shape)) for o in ops]

    out = pl.pallas_call(
        functools.partial(_cae_kernel, dims=dims),
        out_shape=jax.ShapeDtypeStruct((B, 3, dims["h5"], dims["w5"]),
                                       x_nchw.dtype),
        grid=(B,),
        in_specs=in_specs,
        out_specs=pl.BlockSpec((1, 3, dims["h5"], dims["w5"]),
                               lambda b: (b, 0, 0, 0)),
        compiler_params=pltpu.CompilerParams(
            dimension_semantics=("parallel",)),
    )(x_rows, *ops)
    return out


# --------------------------------------------------------------------------
# Parameters and a plain-XLA reference (used only for the self-check).
# --------------------------------------------------------------------------

def init_params(key):
    def conv_init(k, cout, cin, ksz=3):
        kw_, kb_ = jax.random.split(k)
        fan_in = cin * ksz * ksz
        bound = 1.0 / (fan_in ** 0.5)
        w = jax.random.uniform(kw_, (cout, cin, ksz, ksz), jnp.float32,
                               -bound, bound)
        b = jax.random.uniform(kb_, (cout,), jnp.float32, -bound, bound)
        return w, b

    def bn_init(k, c):
        k1, k2, k3, k4 = jax.random.split(k, 4)
        gamma = 1.0 + 0.1 * jax.random.normal(k1, (c,), jnp.float32)
        beta = 0.1 * jax.random.normal(k2, (c,), jnp.float32)
        mean = 0.1 * jax.random.normal(k3, (c,), jnp.float32)
        var = jax.random.uniform(k4, (c,), jnp.float32, 0.5, 1.5)
        return gamma, beta, mean, var

    keys = jax.random.split(key, 7)
    return {
        "conv1": conv_init(keys[0], 8, 3),
        "conv2": conv_init(keys[1], 12, 8),
        "conv3": conv_init(keys[2], 16, 12),
        "conv4": conv_init(keys[3], 12, 16),
        "conv5": conv_init(keys[4], 3, 12),
        "bn1": bn_init(keys[5], 8),    # (gamma, beta, running_mean, running_var)
        "bn2": bn_init(keys[6], 12),
    }


def reference_forward(params, x):
    """Pure-XLA eval-mode reference of the PyTorch module (NCHW)."""
    def conv(x, w, b):
        y = jax.lax.conv_general_dilated(
            x, w, (1, 1), "VALID",
            dimension_numbers=("NCHW", "OIHW", "NCHW"),
            precision=jax.lax.Precision.HIGHEST)
        return y + b[None, :, None, None]

    def pool(x):
        return jax.lax.reduce_window(x, -jnp.inf, jax.lax.max,
                                     (1, 1, 2, 2), (1, 1, 2, 2), "VALID")

    def bn(x, gamma, beta, mean, var):
        inv = gamma / jnp.sqrt(var + EPS)
        return (x - mean[None, :, None, None]) * inv[None, :, None, None] \
            + beta[None, :, None, None]

    def up(x):
        return jnp.repeat(jnp.repeat(x, 2, axis=2), 2, axis=3)

    w, b = params["conv1"]
    x = bn(pool(jnp.maximum(conv(x, w, b), 0.0)), *params["bn1"])
    w, b = params["conv2"]
    x = bn(pool(jnp.maximum(conv(x, w, b), 0.0)), *params["bn2"])
    w, b = params["conv3"]
    x = up(jnp.maximum(conv(x, w, b), 0.0))
    w, b = params["conv4"]
    x = up(jnp.maximum(conv(x, w, b), 0.0))
    w, b = params["conv5"]
    x = conv(x, w, b)
    return jax.nn.softmax(x, axis=1)


# --------------------------------------------------------------------------

if __name__ == "__main__":
    key = jax.random.PRNGKey(0)
    pkey, xkey = jax.random.split(key)
    params = init_params(pkey)

    # (B=2, C=3, H=34, W=34) -> output (2, 3, 14, 14)
    x = jax.random.normal(xkey, (2, 3, 34, 34), jnp.float32)

    ops, dims = prepare_operands(params, 34, 34)
    fwd = jax.jit(functools.partial(cae_forward, dims=dims))
    out = jax.block_until_ready(fwd(x, ops))

    assert out.shape == (2, 3, 14, 14), out.shape

    # channel softmax sanity: sums over dim=1 should be ~1
    s = jax.block_until_ready(jnp.sum(out, axis=1))
    assert bool(jnp.allclose(s, 1.0, atol=1e-5)), "softmax over channels failed"

    # numerical check against a plain-XLA reference of the same forward pass
    ref = jax.block_until_ready(jax.jit(reference_forward)(params, x))
    err = float(jnp.max(jnp.abs(out - ref)))
    assert err < 5e-3, f"mismatch vs reference: max abs err {err}"

    print("KERNEL_OK")
</pallas_src>

<mosaic_0001>
module attributes {stable_mosaic.version = 11 : i64} {
  func.func @_cae_kernel(%arg0: i32, %arg1: memref<1x34x102xf32, #tpu.memory_space<vmem>>, %arg2: memref<3x102x256xf32, #tpu.memory_space<vmem>>, %arg3: memref<1x256xf32, #tpu.memory_space<vmem>>, %arg4: memref<16x32xf32, #tpu.memory_space<vmem>>, %arg5: memref<16x32xf32, #tpu.memory_space<vmem>>, %arg6: memref<3x128x168xf32, #tpu.memory_space<vmem>>, %arg7: memref<1x168xf32, #tpu.memory_space<vmem>>, %arg8: memref<7x14xf32, #tpu.memory_space<vmem>>, %arg9: memref<7x14xf32, #tpu.memory_space<vmem>>, %arg10: memref<3x84x160xf32, #tpu.memory_space<vmem>>, %arg11: memref<1x160xf32, #tpu.memory_space<vmem>>, %arg12: memref<10x5xf32, #tpu.memory_space<vmem>>, %arg13: memref<3x160x192xf32, #tpu.memory_space<vmem>>, %arg14: memref<1x192xf32, #tpu.memory_space<vmem>>, %arg15: memref<16x8xf32, #tpu.memory_space<vmem>>, %arg16: memref<3x192x42xf32, #tpu.memory_space<vmem>>, %arg17: memref<1x42xf32, #tpu.memory_space<vmem>>, %arg18: memref<1x3x14x14xf32, #tpu.memory_space<vmem>>) attributes {dimension_semantics = [#tpu.dimension_semantics<parallel>], iteration_bounds = array<i64: 2>, scalar_prefetch = 0 : i64, scratch_operands = 0 : i64, tpu.core_type = #tpu.core_type<tc>, window_params = [{transform_indices = @transform_0, window_bounds = array<i64: 1, 34, 102>}, {pipeline_mode = #tpu.pipeline_mode<synchronous>, transform_indices = @transform_1, window_bounds = array<i64: 3, 102, 256>}, {pipeline_mode = #tpu.pipeline_mode<synchronous>, transform_indices = @transform_2, window_bounds = array<i64: 1, 256>}, {pipeline_mode = #tpu.pipeline_mode<synchronous>, transform_indices = @transform_3, window_bounds = array<i64: 16, 32>}, {pipeline_mode = #tpu.pipeline_mode<synchronous>, transform_indices = @transform_4, window_bounds = array<i64: 16, 32>}, {pipeline_mode = #tpu.pipeline_mode<synchronous>, transform_indices = @transform_5, window_bounds = array<i64: 3, 128, 168>}, {pipeline_mode = #tpu.pipeline_mode<synchronous>, transform_indices = @transform_6, window_bounds = array<i64: 1, 168>}, {pipeline_mode = #tpu.pipeline_mode<synchronous>, transform_indices = @transform_7, window_bounds = array<i64: 7, 14>}, {pipeline_mode = #tpu.pipeline_mode<synchronous>, transform_indices = @transform_8, window_bounds = array<i64: 7, 14>}, {pipeline_mode = #tpu.pipeline_mode<synchronous>, transform_indices = @transform_9, window_bounds = array<i64: 3, 84, 160>}, {pipeline_mode = #tpu.pipeline_mode<synchronous>, transform_indices = @transform_10, window_bounds = array<i64: 1, 160>}, {pipeline_mode = #tpu.pipeline_mode<synchronous>, transform_indices = @transform_11, window_bounds = array<i64: 10, 5>}, {pipeline_mode = #tpu.pipeline_mode<synchronous>, transform_indices = @transform_12, window_bounds = array<i64: 3, 160, 192>}, {pipeline_mode = #tpu.pipeline_mode<synchronous>, transform_indices = @transform_13, window_bounds = array<i64: 1, 192>}, {pipeline_mode = #tpu.pipeline_mode<synchronous>, transform_indices = @transform_14, window_bounds = array<i64: 16, 8>}, {pipeline_mode = #tpu.pipeline_mode<synchronous>, transform_indices = @transform_15, window_bounds = array<i64: 3, 192, 42>}, {pipeline_mode = #tpu.pipeline_mode<synchronous>, transform_indices = @transform_16, window_bounds = array<i64: 1, 42>}, {transform_indices = @transform_17, window_bounds = array<i64: 1, 3, 14, 14>}]} {
    %c0 = arith.constant 0 : index
    %c0_0 = arith.constant 0 : index
    %c0_1 = arith.constant 0 : index
    %0 = vector.load %arg1[%c0, %c0_0, %c0_1] : memref<1x34x102xf32, #tpu.memory_space<vmem>>, vector<1x34x102xf32>
    %1 = vector.shape_cast %0 : vector<1x34x102xf32> to vector<34x102xf32>
    %2 = vector.extract_strided_slice %1 {offsets = [0, 0], sizes = [32, 102], strides = [1, 1]} : vector<34x102xf32> to vector<32x102xf32>
    %c0_2 = arith.constant 0 : index
    %c0_3 = arith.constant 0 : index
    %c0_4 = arith.constant 0 : index
    %3 = vector.load %arg2[%c0_2, %c0_3, %c0_4] : memref<3x102x256xf32, #tpu.memory_space<vmem>>, vector<1x102x256xf32>
    %4 = vector.shape_cast %3 : vector<1x102x256xf32> to vector<102x256xf32>
    %cst = arith.constant dense<0.000000e+00> : vector<32x256xf32>
    %5 = tpu.matmul %2, %4, %cst {dimension_numbers = #tpu.dot_dimension_numbers<[1], [0], [0], [1], [0, 0, 1, 1], [], []>} : vector<32x102xf32>, vector<102x256xf32>, vector<32x256xf32> -> vector<32x256xf32>
    %6 = vector.extract_strided_slice %1 {offsets = [1, 0], sizes = [32, 102], strides = [1, 1]} : vector<34x102xf32> to vector<32x102xf32>
    %c1 = arith.constant 1 : index
    %c0_5 = arith.constant 0 : index
    %c0_6 = arith.constant 0 : index
    %7 = vector.load %arg2[%c1, %c0_5, %c0_6] : memref<3x102x256xf32, #tpu.memory_space<vmem>>, vector<1x102x256xf32>
    %8 = vector.shape_cast %7 : vector<1x102x256xf32> to vector<102x256xf32>
    %cst_7 = arith.constant dense<0.000000e+00> : vector<32x256xf32>
    %9 = tpu.matmul %6, %8, %cst_7 {dimension_numbers = #tpu.dot_dimension_numbers<[1], [0], [0], [1], [0, 0, 1, 1], [], []>} : vector<32x102xf32>, vector<102x256xf32>, vector<32x256xf32> -> vector<32x256xf32>
    %10 = arith.addf %5, %9 : vector<32x256xf32>
    %11 = vector.extract_strided_slice %1 {offsets = [2, 0], sizes = [32, 102], strides = [1, 1]} : vector<34x102xf32> to vector<32x102xf32>
    %c2 = arith.constant 2 : index
    %c0_8 = arith.constant 0 : index
    %c0_9 = arith.constant 0 : index
    %12 = vector.load %arg2[%c2, %c0_8, %c0_9] : memref<3x102x256xf32, #tpu.memory_space<vmem>>, vector<1x102x256xf32>
    %13 = vector.shape_cast %12 : vector<1x102x256xf32> to vector<102x256xf32>
    %cst_10 = arith.constant dense<0.000000e+00> : vector<32x256xf32>
    %14 = tpu.matmul %11, %13, %cst_10 {dimension_numbers = #tpu.dot_dimension_numbers<[1], [0], [0], [1], [0, 0, 1, 1], [], []>} : vector<32x102xf32>, vector<102x256xf32>, vector<32x256xf32> -> vector<32x256xf32>
    %15 = arith.addf %10, %14 : vector<32x256xf32>
    %c0_11 = arith.constant 0 : index
    %c0_12 = arith.constant 0 : index
    %16 = vector.load %arg3[%c0_11, %c0_12] : memref<1x256xf32, #tpu.memory_space<vmem>>, vector<1x256xf32>
    %17 = vector.broadcast %16 : vector<1x256xf32> to vector<32x256xf32>
    %18 = arith.addf %15, %17 : vector<32x256xf32>
    %cst_13 = arith.constant 0.000000e+00 : f32
    %19 = vector.broadcast %cst_13 : f32 to vector<32x256xf32>
    %20 = arith.maximumf %18, %19 : vector<32x256xf32>
    %21 = vector.extract_strided_slice %20 {offsets = [0, 0], sizes = [32, 128], strides = [1, 1]} : vector<32x256xf32> to vector<32x128xf32>
    %22 = vector.extract_strided_slice %20 {offsets = [0, 128], sizes = [32, 128], strides = [1, 1]} : vector<32x256xf32> to vector<32x128xf32>
    %23 = arith.maximumf %21, %22 : vector<32x128xf32>
    %c0_14 = arith.constant 0 : index
    %c0_15 = arith.constant 0 : index
    %24 = vector.load %arg4[%c0_14, %c0_15] : memref<16x32xf32, #tpu.memory_space<vmem>>, vector<16x32xf32>
    %cst_16 = arith.constant dense<0.000000e+00> : vector<16x128xf32>
    %25 = tpu.matmul %24, %23, %cst_16 {dimension_numbers = #tpu.dot_dimension_numbers<[1], [0], [0], [1], [0, 0, 1, 1], [], []>} : vector<16x32xf32>, vector<32x128xf32>, vector<16x128xf32> -> vector<16x128xf32>
    %c0_17 = arith.constant 0 : index
    %c0_18 = arith.constant 0 : index
    %26 = vector.load %arg5[%c0_17, %c0_18] : memref<16x32xf32, #tpu.memory_space<vmem>>, vector<16x32xf32>
    %cst_19 = arith.constant dense<0.000000e+00> : vector<16x128xf32>
    %27 = tpu.matmul %26, %23, %cst_19 {dimension_numbers = #tpu.dot_dimension_numbers<[1], [0], [0], [1], [0, 0, 1, 1], [], []>} : vector<16x32xf32>, vector<32x128xf32>, vector<16x128xf32> -> vector<16x128xf32>
    %28 = arith.maximumf %25, %27 : vector<16x128xf32>
    %29 = vector.extract_strided_slice %28 {offsets = [0, 0], sizes = [14, 128], strides = [1, 1]} : vector<16x128xf32> to vector<14x128xf32>
    %c0_20 = arith.constant 0 : index
    %c0_21 = arith.constant 0 : index
    %c0_22 = arith.constant 0 : index
    %30 = vector.load %arg6[%c0_20, %c0_21, %c0_22] : memref<3x128x168xf32, #tpu.memory_space<vmem>>, vector<1x128x168xf32>
    %31 = vector.shape_cast %30 : vector<1x128x168xf32> to vector<128x168xf32>
    %cst_23 = arith.constant dense<0.000000e+00> : vector<14x168xf32>
    %32 = tpu.matmul %29, %31, %cst_23 {dimension_numbers = #tpu.dot_dimension_numbers<[1], [0], [0], [1], [0, 0, 1, 1], [], []>} : vector<14x128xf32>, vector<128x168xf32>, vector<14x168xf32> -> vector<14x168xf32>
    %33 = vector.extract_strided_slice %28 {offsets = [1, 0], sizes = [14, 128], strides = [1, 1]} : vector<16x128xf32> to vector<14x128xf32>
    %c1_24 = arith.constant 1 : index
    %c0_25 = arith.constant 0 : index
    %c0_26 = arith.constant 0 : index
    %34 = vector.load %arg6[%c1_24, %c0_25, %c0_26] : memref<3x128x168xf32, #tpu.memory_space<vmem>>, vector<1x128x168xf32>
    %35 = vector.shape_cast %34 : vector<1x128x168xf32> to vector<128x168xf32>
    %cst_27 = arith.constant dense<0.000000e+00> : vector<14x168xf32>
    %36 = tpu.matmul %33, %35, %cst_27 {dimension_numbers = #tpu.dot_dimension_numbers<[1], [0], [0], [1], [0, 0, 1, 1], [], []>} : vector<14x128xf32>, vector<128x168xf32>, vector<14x168xf32> -> vector<14x168xf32>
    %37 = arith.addf %32, %36 : vector<14x168xf32>
    %38 = vector.extract_strided_slice %28 {offsets = [2, 0], sizes = [14, 128], strides = [1, 1]} : vector<16x128xf32> to vector<14x128xf32>
    %c2_28 = arith.constant 2 : index
    %c0_29 = arith.constant 0 : index
    %c0_30 = arith.constant 0 : index
    %39 = vector.load %arg6[%c2_28, %c0_29, %c0_30] : memref<3x128x168xf32, #tpu.memory_space<vmem>>, vector<1x128x168xf32>
    %40 = vector.shape_cast %39 : vector<1x128x168xf32> to vector<128x168xf32>
    %cst_31 = arith.constant dense<0.000000e+00> : vector<14x168xf32>
    %41 = tpu.matmul %38, %40, %cst_31 {dimension_numbers = #tpu.dot_dimension_numbers<[1], [0], [0], [1], [0, 0, 1, 1], [], []>} : vector<14x128xf32>, vector<128x168xf32>, vector<14x168xf32> -> vector<14x168xf32>
    %42 = arith.addf %37, %41 : vector<14x168xf32>
    %c0_32 = arith.constant 0 : index
    %c0_33 = arith.constant 0 : index
    %43 = vector.load %arg7[%c0_32, %c0_33] : memref<1x168xf32, #tpu.memory_space<vmem>>, vector<1x168xf32>
    %44 = vector.broadcast %43 : vector<1x168xf32> to vector<14x168xf32>
    %45 = arith.addf %42, %44 : vector<14x168xf32>
    %cst_34 = arith.constant 0.000000e+00 : f32
    %46 = vector.broadcast %cst_34 : f32 to vector<14x168xf32>
    %47 = arith.maximumf %45, %46 : vector<14x168xf32>
    %48 = vector.extract_strided_slice %47 {offsets = [0, 0], sizes = [14, 84], strides = [1, 1]} : vector<14x168xf32> to vector<14x84xf32>
    %49 = vector.extract_strided_slice %47 {offsets = [0, 84], sizes = [14, 84], strides = [1, 1]} : vector<14x168xf32> to vector<14x84xf32>
    %50 = arith.maximumf %48, %49 : vector<14x84xf32>
    %c0_35 = arith.constant 0 : index
    %c0_36 = arith.constant 0 : index
    %51 = vector.load %arg8[%c0_35, %c0_36] : memref<7x14xf32, #tpu.memory_space<vmem>>, vector<7x14xf32>
    %cst_37 = arith.constant dense<0.000000e+00> : vector<7x84xf32>
    %52 = tpu.matmul %51, %50, %cst_37 {dimension_numbers = #tpu.dot_dimension_numbers<[1], [0], [0], [1], [0, 0, 1, 1], [], []>} : vector<7x14xf32>, vector<14x84xf32>, vector<7x84xf32> -> vector<7x84xf32>
    %c0_38 = arith.constant 0 : index
    %c0_39 = arith.constant 0 : index
    %53 = vector.load %arg9[%c0_38, %c0_39] : memref<7x14xf32, #tpu.memory_space<vmem>>, vector<7x14xf32>
    %cst_40 = arith.constant dense<0.000000e+00> : vector<7x84xf32>
    %54 = tpu.matmul %53, %50, %cst_40 {dimension_numbers = #tpu.dot_dimension_numbers<[1], [0], [0], [1], [0, 0, 1, 1], [], []>} : vector<7x14xf32>, vector<14x84xf32>, vector<7x84xf32> -> vector<7x84xf32>
    %55 = arith.maximumf %52, %54 : vector<7x84xf32>
    %56 = vector.extract_strided_slice %55 {offsets = [0, 0], sizes = [5, 84], strides = [1, 1]} : vector<7x84xf32> to vector<5x84xf32>
    %c0_41 = arith.constant 0 : index
    %c0_42 = arith.constant 0 : index
    %c0_43 = arith.constant 0 : index
    %57 = vector.load %arg10[%c0_41, %c0_42, %c0_43] : memref<3x84x160xf32, #tpu.memory_space<vmem>>, vector<1x84x160xf32>
    %58 = vector.shape_cast %57 : vector<1x84x160xf32> to vector<84x160xf32>
    %cst_44 = arith.constant dense<0.000000e+00> : vector<5x160xf32>
    %59 = tpu.matmul %56, %58, %cst_44 {dimension_numbers = #tpu.dot_dimension_numbers<[1], [0], [0], [1], [0, 0, 1, 1], [], []>} : vector<5x84xf32>, vector<84x160xf32>, vector<5x160xf32> -> vector<5x160xf32>
    %60 = vector.extract_strided_slice %55 {offsets = [1, 0], sizes = [5, 84], strides = [1, 1]} : vector<7x84xf32> to vector<5x84xf32>
    %c1_45 = arith.constant 1 : index
    %c0_46 = arith.constant 0 : index
    %c0_47 = arith.constant 0 : index
    %61 = vector.load %arg10[%c1_45, %c0_46, %c0_47] : memref<3x84x160xf32, #tpu.memory_space<vmem>>, vector<1x84x160xf32>
    %62 = vector.shape_cast %61 : vector<1x84x160xf32> to vector<84x160xf32>
    %cst_48 = arith.constant dense<0.000000e+00> : vector<5x160xf32>
    %63 = tpu.matmul %60, %62, %cst_48 {dimension_numbers = #tpu.dot_dimension_numbers<[1], [0], [0], [1], [0, 0, 1, 1], [], []>} : vector<5x84xf32>, vector<84x160xf32>, vector<5x160xf32> -> vector<5x160xf32>
    %64 = arith.addf %59, %63 : vector<5x160xf32>
    %65 = vector.extract_strided_slice %55 {offsets = [2, 0], sizes = [5, 84], strides = [1, 1]} : vector<7x84xf32> to vector<5x84xf32>
    %c2_49 = arith.constant 2 : index
    %c0_50 = arith.constant 0 : index
    %c0_51 = arith.constant 0 : index
    %66 = vector.load %arg10[%c2_49, %c0_50, %c0_51] : memref<3x84x160xf32, #tpu.memory_space<vmem>>, vector<1x84x160xf32>
    %67 = vector.shape_cast %66 : vector<1x84x160xf32> to vector<84x160xf32>
    %cst_52 = arith.constant dense<0.000000e+00> : vector<5x160xf32>
    %68 = tpu.matmul %65, %67, %cst_52 {dimension_numbers = #tpu.dot_dimension_numbers<[1], [0], [0], [1], [0, 0, 1, 1], [], []>} : vector<5x84xf32>, vector<84x160xf32>, vector<5x160xf32> -> vector<5x160xf32>
    %69 = arith.addf %64, %68 : vector<5x160xf32>
    %c0_53 = arith.constant 0 : index
    %c0_54 = arith.constant 0 : index
    %70 = vector.load %arg11[%c0_53, %c0_54] : memref<1x160xf32, #tpu.memory_space<vmem>>, vector<1x160xf32>
    %71 = vector.broadcast %70 : vector<1x160xf32> to vector<5x160xf32>
    %72 = arith.addf %69, %71 : vector<5x160xf32>
    %cst_55 = arith.constant 0.000000e+00 : f32
    %73 = vector.broadcast %cst_55 : f32 to vector<5x160xf32>
    %74 = arith.maximumf %72, %73 : vector<5x160xf32>
    %c0_56 = arith.constant 0 : index
    %c0_57 = arith.constant 0 : index
    %75 = vector.load %arg12[%c0_56, %c0_57] : memref<10x5xf32, #tpu.memory_space<vmem>>, vector<10x5xf32>
    %cst_58 = arith.constant dense<0.000000e+00> : vector<10x160xf32>
    %76 = tpu.matmul %75, %74, %cst_58 {dimension_numbers = #tpu.dot_dimension_numbers<[1], [0], [0], [1], [0, 0, 1, 1], [], []>} : vector<10x5xf32>, vector<5x160xf32>, vector<10x160xf32> -> vector<10x160xf32>
    %77 = vector.extract_strided_slice %76 {offsets = [0, 0], sizes = [8, 160], strides = [1, 1]} : vector<10x160xf32> to vector<8x160xf32>
    %c0_59 = arith.constant 0 : index
    %c0_60 = arith.constant 0 : index
    %c0_61 = arith.constant 0 : index
    %78 = vector.load %arg13[%c0_59, %c0_60, %c0_61] : memref<3x160x192xf32, #tpu.memory_space<vmem>>, vector<1x160x192xf32>
    %79 = vector.shape_cast %78 : vector<1x160x192xf32> to vector<160x192xf32>
    %cst_62 = arith.constant dense<0.000000e+00> : vector<8x192xf32>
    %80 = tpu.matmul %77, %79, %cst_62 {dimension_numbers = #tpu.dot_dimension_numbers<[1], [0], [0], [1], [0, 0, 1, 1], [], []>} : vector<8x160xf32>, vector<160x192xf32>, vector<8x192xf32> -> vector<8x192xf32>
    %81 = vector.extract_strided_slice %76 {offsets = [1, 0], sizes = [8, 160], strides = [1, 1]} : vector<10x160xf32> to vector<8x160xf32>
    %c1_63 = arith.constant 1 : index
    %c0_64 = arith.constant 0 : index
    %c0_65 = arith.constant 0 : index
    %82 = vector.load %arg13[%c1_63, %c0_64, %c0_65] : memref<3x160x192xf32, #tpu.memory_space<vmem>>, vector<1x160x192xf32>
    %83 = vector.shape_cast %82 : vector<1x160x192xf32> to vector<160x192xf32>
    %cst_66 = arith.constant dense<0.000000e+00> : vector<8x192xf32>
    %84 = tpu.matmul %81, %83, %cst_66 {dimension_numbers = #tpu.dot_dimension_numbers<[1], [0], [0], [1], [0, 0, 1, 1], [], []>} : vector<8x160xf32>, vector<160x192xf32>, vector<8x192xf32> -> vector<8x192xf32>
    %85 = arith.addf %80, %84 : vector<8x192xf32>
    %86 = vector.extract_strided_slice %76 {offsets = [2, 0], sizes = [8, 160], strides = [1, 1]} : vector<10x160xf32> to vector<8x160xf32>
    %c2_67 = arith.constant 2 : index
    %c0_68 = arith.constant 0 : index
    %c0_69 = arith.constant 0 : index
    %87 = vector.load %arg13[%c2_67, %c0_68, %c0_69] : memref<3x160x192xf32, #tpu.memory_space<vmem>>, vector<1x160x192xf32>
    %88 = vector.shape_cast %87 : vector<1x160x192xf32> to vector<160x192xf32>
    %cst_70 = arith.constant dense<0.000000e+00> : vector<8x192xf32>
    %89 = tpu.matmul %86, %88, %cst_70 {dimension_numbers = #tpu.dot_dimension_numbers<[1], [0], [0], [1], [0, 0, 1, 1], [], []>} : vector<8x160xf32>, vector<160x192xf32>, vector<8x192xf32> -> vector<8x192xf32>
    %90 = arith.addf %85, %89 : vector<8x192xf32>
    %c0_71 = arith.constant 0 : index
    %c0_72 = arith.constant 0 : index
    %91 = vector.load %arg14[%c0_71, %c0_72] : memref<1x192xf32, #tpu.memory_space<vmem>>, vector<1x192xf32>
    %92 = vector.broadcast %91 : vector<1x192xf32> to vector<8x192xf32>
    %93 = arith.addf %90, %92 : vector<8x192xf32>
    %cst_73 = arith.constant 0.000000e+00 : f32
    %94 = vector.broadcast %cst_73 : f32 to vector<8x192xf32>
    %95 = arith.maximumf %93, %94 : vector<8x192xf32>
    %c0_74 = arith.constant 0 : index
    %c0_75 = arith.constant 0 : index
    %96 = vector.load %arg15[%c0_74, %c0_75] : memref<16x8xf32, #tpu.memory_space<vmem>>, vector<16x8xf32>
    %cst_76 = arith.constant dense<0.000000e+00> : vector<16x192xf32>
    %97 = tpu.matmul %96, %95, %cst_76 {dimension_numbers = #tpu.dot_dimension_numbers<[1], [0], [0], [1], [0, 0, 1, 1], [], []>} : vector<16x8xf32>, vector<8x192xf32>, vector<16x192xf32> -> vector<16x192xf32>
    %98 = vector.extract_strided_slice %97 {offsets = [0, 0], sizes = [14, 192], strides = [1, 1]} : vector<16x192xf32> to vector<14x192xf32>
    %c0_77 = arith.constant 0 : index
    %c0_78 = arith.constant 0 : index
    %c0_79 = arith.constant 0 : index
    %99 = vector.load %arg16[%c0_77, %c0_78, %c0_79] : memref<3x192x42xf32, #tpu.memory_space<vmem>>, vector<1x192x42xf32>
    %100 = vector.shape_cast %99 : vector<1x192x42xf32> to vector<192x42xf32>
    %cst_80 = arith.constant dense<0.000000e+00> : vector<14x42xf32>
    %101 = tpu.matmul %98, %100, %cst_80 {dimension_numbers = #tpu.dot_dimension_numbers<[1], [0], [0], [1], [0, 0, 1, 1], [], []>} : vector<14x192xf32>, vector<192x42xf32>, vector<14x42xf32> -> vector<14x42xf32>
    %102 = vector.extract_strided_slice %97 {offsets = [1, 0], sizes = [14, 192], strides = [1, 1]} : vector<16x192xf32> to vector<14x192xf32>
    %c1_81 = arith.constant 1 : index
    %c0_82 = arith.constant 0 : index
    %c0_83 = arith.constant 0 : index
    %103 = vector.load %arg16[%c1_81, %c0_82, %c0_83] : memref<3x192x42xf32, #tpu.memory_space<vmem>>, vector<1x192x42xf32>
    %104 = vector.shape_cast %103 : vector<1x192x42xf32> to vector<192x42xf32>
    %cst_84 = arith.constant dense<0.000000e+00> : vector<14x42xf32>
    %105 = tpu.matmul %102, %104, %cst_84 {dimension_numbers = #tpu.dot_dimension_numbers<[1], [0], [0], [1], [0, 0, 1, 1], [], []>} : vector<14x192xf32>, vector<192x42xf32>, vector<14x42xf32> -> vector<14x42xf32>
    %106 = arith.addf %101, %105 : vector<14x42xf32>
    %107 = vector.extract_strided_slice %97 {offsets = [2, 0], sizes = [14, 192], strides = [1, 1]} : vector<16x192xf32> to vector<14x192xf32>
    %c2_85 = arith.constant 2 : index
    %c0_86 = arith.constant 0 : index
    %c0_87 = arith.constant 0 : index
    %108 = vector.load %arg16[%c2_85, %c0_86, %c0_87] : memref<3x192x42xf32, #tpu.memory_space<vmem>>, vector<1x192x42xf32>
    %109 = vector.shape_cast %108 : vector<1x192x42xf32> to vector<192x42xf32>
    %cst_88 = arith.constant dense<0.000000e+00> : vector<14x42xf32>
    %110 = tpu.matmul %107, %109, %cst_88 {dimension_numbers = #tpu.dot_dimension_numbers<[1], [0], [0], [1], [0, 0, 1, 1], [], []>} : vector<14x192xf32>, vector<192x42xf32>, vector<14x42xf32> -> vector<14x42xf32>
    %111 = arith.addf %106, %110 : vector<14x42xf32>
    %c0_89 = arith.constant 0 : index
    %c0_90 = arith.constant 0 : index
    %112 = vector.load %arg17[%c0_89, %c0_90] : memref<1x42xf32, #tpu.memory_space<vmem>>, vector<1x42xf32>
    %113 = vector.broadcast %112 : vector<1x42xf32> to vector<14x42xf32>
    %114 = arith.addf %111, %113 : vector<14x42xf32>
    %115 = vector.extract_strided_slice %114 {offsets = [0, 0], sizes = [14, 14], strides = [1, 1]} : vector<14x42xf32> to vector<14x14xf32>
    %116 = vector.extract_strided_slice %114 {offsets = [0, 14], sizes = [14, 14], strides = [1, 1]} : vector<14x42xf32> to vector<14x14xf32>
    %117 = vector.extract_strided_slice %114 {offsets = [0, 28], sizes = [14, 14], strides = [1, 1]} : vector<14x42xf32> to vector<14x14xf32>
    %118 = arith.maximumf %115, %116 : vector<14x14xf32>
    %119 = arith.maximumf %118, %117 : vector<14x14xf32>
    %120 = arith.subf %115, %119 : vector<14x14xf32>
    %121 = math.exp %120 : vector<14x14xf32>
    %122 = arith.subf %116, %119 : vector<14x14xf32>
    %123 = math.exp %122 : vector<14x14xf32>
    %124 = arith.subf %117, %119 : vector<14x14xf32>
    %125 = math.exp %124 : vector<14x14xf32>
    %126 = arith.addf %121, %123 : vector<14x14xf32>
    %127 = arith.addf %126, %125 : vector<14x14xf32>
    %cst_91 = arith.constant 1.000000e+00 : f32
    %128 = vector.broadcast %cst_91 : f32 to vector<14x14xf32>
    %129 = arith.divf %128, %127 : vector<14x14xf32>
    %130 = arith.mulf %121, %129 : vector<14x14xf32>
    %c0_92 = arith.constant 0 : index
    %c0_93 = arith.constant 0 : index
    %c0_94 = arith.constant 0 : index
    %c0_95 = arith.constant 0 : index
    %131 = vector.load %arg18[%c0_92, %c0_93, %c0_94, %c0_95] : memref<1x3x14x14xf32, #tpu.memory_space<vmem>>, vector<1x1x14x14xf32>
    %132 = vector.shape_cast %131 : vector<1x1x14x14xf32> to vector<14x14xf32>
    %133 = vector.shape_cast %130 : vector<14x14xf32> to vector<1x1x14x14xf32>
    tpu.vector_store %arg18[%c0_92, %c0_93, %c0_94, %c0_95], %133 {strides = array<i32>} : memref<1x3x14x14xf32, #tpu.memory_space<vmem>>, vector<1x1x14x14xf32>,
    %134 = arith.mulf %123, %129 : vector<14x14xf32>
    %c0_96 = arith.constant 0 : index
    %c1_97 = arith.constant 1 : index
    %c0_98 = arith.constant 0 : index
    %c0_99 = arith.constant 0 : index
    %135 = vector.load %arg18[%c0_96, %c1_97, %c0_98, %c0_99] : memref<1x3x14x14xf32, #tpu.memory_space<vmem>>, vector<1x1x14x14xf32>
    %136 = vector.shape_cast %135 : vector<1x1x14x14xf32> to vector<14x14xf32>
    %137 = vector.shape_cast %134 : vector<14x14xf32> to vector<1x1x14x14xf32>
    tpu.vector_store %arg18[%c0_96, %c1_97, %c0_98, %c0_99], %137 {strides = array<i32>} : memref<1x3x14x14xf32, #tpu.memory_space<vmem>>, vector<1x1x14x14xf32>,
    %138 = arith.mulf %125, %129 : vector<14x14xf32>
    %c0_100 = arith.constant 0 : index
    %c2_101 = arith.constant 2 : index
    %c0_102 = arith.constant 0 : index
    %c0_103 = arith.constant 0 : index
    %139 = vector.load %arg18[%c0_100, %c2_101, %c0_102, %c0_103] : memref<1x3x14x14xf32, #tpu.memory_space<vmem>>, vector<1x1x14x14xf32>
    %140 = vector.shape_cast %139 : vector<1x1x14x14xf32> to vector<14x14xf32>
    %141 = vector.shape_cast %138 : vector<14x14xf32> to vector<1x1x14x14xf32>
    tpu.vector_store %arg18[%c0_100, %c2_101, %c0_102, %c0_103], %141 {strides = array<i32>} : memref<1x3x14x14xf32, #tpu.memory_space<vmem>>, vector<1x1x14x14xf32>,
    return
  }
  func.func @transform_0(%arg0: i32) -> (i32, i32, i32) {
    %c0_i32 = arith.constant 0 : i32
    %c0_i32_0 = arith.constant 0 : i32
    %c0_i32_1 = arith.constant 0 : i32
    return %arg0, %c0_i32, %c0_i32_0 : i32, i32, i32
  }
  func.func @transform_1(%arg0: i32) -> (i32, i32, i32) {
    %c0_i32 = arith.constant 0 : i32
    %c0_i32_0 = arith.constant 0 : i32
    %c0_i32_1 = arith.constant 0 : i32
    %c0_i32_2 = arith.constant 0 : i32
    return %c0_i32, %c0_i32_0, %c0_i32_1 : i32, i32, i32
  }
  func.func @transform_2(%arg0: i32) -> (i32, i32) {
    %c0_i32 = arith.constant 0 : i32
    %c0_i32_0 = arith.constant 0 : i32
    %c0_i32_1 = arith.constant 0 : i32
    return %c0_i32, %c0_i32_0 : i32, i32
  }
  func.func @transform_3(%arg0: i32) -> (i32, i32) {
    %c0_i32 = arith.constant 0 : i32
    %c0_i32_0 = arith.constant 0 : i32
    %c0_i32_1 = arith.constant 0 : i32
    return %c0_i32, %c0_i32_0 : i32, i32
  }
  func.func @transform_4(%arg0: i32) -> (i32, i32) {
    %c0_i32 = arith.constant 0 : i32
    %c0_i32_0 = arith.constant 0 : i32
    %c0_i32_1 = arith.constant 0 : i32
    return %c0_i32, %c0_i32_0 : i32, i32
  }
  func.func @transform_5(%arg0: i32) -> (i32, i32, i32) {
    %c0_i32 = arith.constant 0 : i32
    %c0_i32_0 = arith.constant 0 : i32
    %c0_i32_1 = arith.constant 0 : i32
    %c0_i32_2 = arith.constant 0 : i32
    return %c0_i32, %c0_i32_0, %c0_i32_1 : i32, i32, i32
  }
  func.func @transform_6(%arg0: i32) -> (i32, i32) {
    %c0_i32 = arith.constant 0 : i32
    %c0_i32_0 = arith.constant 0 : i32
    %c0_i32_1 = arith.constant 0 : i32
    return %c0_i32, %c0_i32_0 : i32, i32
  }
  func.func @transform_7(%arg0: i32) -> (i32, i32) {
    %c0_i32 = arith.constant 0 : i32
    %c0_i32_0 = arith.constant 0 : i32
    %c0_i32_1 = arith.constant 0 : i32
    return %c0_i32, %c0_i32_0 : i32, i32
  }
  func.func @transform_8(%arg0: i32) -> (i32, i32) {
    %c0_i32 = arith.constant 0 : i32
    %c0_i32_0 = arith.constant 0 : i32
    %c0_i32_1 = arith.constant 0 : i32
    return %c0_i32, %c0_i32_0 : i32, i32
  }
  func.func @transform_9(%arg0: i32) -> (i32, i32, i32) {
    %c0_i32 = arith.constant 0 : i32
    %c0_i32_0 = arith.constant 0 : i32
    %c0_i32_1 = arith.constant 0 : i32
    %c0_i32_2 = arith.constant 0 : i32
    return %c0_i32, %c0_i32_0, %c0_i32_1 : i32, i32, i32
  }
  func.func @transform_10(%arg0: i32) -> (i32, i32) {
    %c0_i32 = arith.constant 0 : i32
    %c0_i32_0 = arith.constant 0 : i32
    %c0_i32_1 = arith.constant 0 : i32
    return %c0_i32, %c0_i32_0 : i32, i32
  }
  func.func @transform_11(%arg0: i32) -> (i32, i32) {
    %c0_i32 = arith.constant 0 : i32
    %c0_i32_0 = arith.constant 0 : i32
    %c0_i32_1 = arith.constant 0 : i32
    return %c0_i32, %c0_i32_0 : i32, i32
  }
  func.func @transform_12(%arg0: i32) -> (i32, i32, i32) {
    %c0_i32 = arith.constant 0 : i32
    %c0_i32_0 = arith.constant 0 : i32
    %c0_i32_1 = arith.constant 0 : i32
    %c0_i32_2 = arith.constant 0 : i32
    return %c0_i32, %c0_i32_0, %c0_i32_1 : i32, i32, i32
  }
  func.func @transform_13(%arg0: i32) -> (i32, i32) {
    %c0_i32 = arith.constant 0 : i32
    %c0_i32_0 = arith.constant 0 : i32
    %c0_i32_1 = arith.constant 0 : i32
    return %c0_i32, %c0_i32_0 : i32, i32
  }
  func.func @transform_14(%arg0: i32) -> (i32, i32) {
    %c0_i32 = arith.constant 0 : i32
    %c0_i32_0 = arith.constant 0 : i32
    %c0_i32_1 = arith.constant 0 : i32
    return %c0_i32, %c0_i32_0 : i32, i32
  }
  func.func @transform_15(%arg0: i32) -> (i32, i32, i32) {
    %c0_i32 = arith.constant 0 : i32
    %c0_i32_0 = arith.constant 0 : i32
    %c0_i32_1 = arith.constant 0 : i32
    %c0_i32_2 = arith.constant 0 : i32
    return %c0_i32, %c0_i32_0, %c0_i32_1 : i32, i32, i32
  }
  func.func @transform_16(%arg0: i32) -> (i32, i32) {
    %c0_i32 = arith.constant 0 : i32
    %c0_i32_0 = arith.constant 0 : i32
    %c0_i32_1 = arith.constant 0 : i32
    return %c0_i32, %c0_i32_0 : i32, i32
  }
  func.func @transform_17(%arg0: i32) -> (i32, i32, i32, i32) {
    %c0_i32 = arith.constant 0 : i32
    %c0_i32_0 = arith.constant 0 : i32
    %c0_i32_1 = arith.constant 0 : i32
    %c0_i32_2 = arith.constant 0 : i32
    return %arg0, %c0_i32, %c0_i32_0, %c0_i32_1 : i32, i32, i32, i32
  }
}

</mosaic_0001>

<bundles_post_ra>
// kernel: cae_forward.1
= control target key start
LH: loop header
LB: loop body
LE: loop exit
PB: predicated region body
PF: predicated region fallthrough
CT: control target
= control target key end

     0   :  { %s4186_s24 = smov 0   ;;  %s5799_s0 = inlined_call_operand.vmem [shape: f32[2,34,102], index: 0, kind: input, shape index: {}]   ;;  %s5800_s1 = inlined_call_operand.vmem [shape: f32[3,102,256], index: 1, kind: input, shape index: {}]   ;;  %s5801_s2 = inlined_call_operand.vmem [shape: f32[1,256], index: 2, kind: input, shape index: {}]   ;;  %s5802_s3 = inlined_call_operand.vmem [shape: f32[16,32], index: 3, kind: input, shape index: {}]   ;;  %s5803_s4 = inlined_call_operand.vmem [shape: f32[16,32], index: 4, kind: input, shape index: {}]   ;;  %s5804_s5 = inlined_call_operand.vmem [shape: f32[3,128,168], index: 5, kind: input, shape index: {}]   ;;  %s5805_s6 = inlined_call_operand.vmem [shape: f32[1,168], index: 6, kind: input, shape index: {}]   ;;  %s5806_s7 = inlined_call_operand.vmem [shape: f32[7,14], index: 7, kind: input, shape index: {}]   ;;  %s5807_s8 = inlined_call_operand.vmem [shape: f32[7,14], index: 8, kind: input, shape index: {}]   ;;  %s5808_s9 = inlined_call_operand.vmem [shape: f32[3,84,160], index: 9, kind: input, shape index: {}]   ;;  %s5809_s10 = inlined_call_operand.vmem [shape: f32[1,160], index: 10, kind: input, shape index: {}]   ;;  %s5810_s11 = inlined_call_operand.vmem [shape: f32[10,5], index: 11, kind: input, shape index: {}]   ;;  %s5811_s12 = inlined_call_operand.vmem [shape: f32[3,160,192], index: 12, kind: input, shape index: {}]   ;;  %s5812_s13 = inlined_call_operand.vmem [shape: f32[1,192], index: 13, kind: input, shape index: {}]   ;;  %s5813_s14 = inlined_call_operand.vmem [shape: f32[16,8], index: 14, kind: input, shape index: {}]   ;;  %s5814_s15 = inlined_call_operand.vmem [shape: f32[3,192,42], index: 15, kind: input, shape index: {}]   ;;  %s5815_s16 = inlined_call_operand.vmem [shape: f32[1,42], index: 16, kind: input, shape index: {}]   ;;  %s5816_s17 = inlined_call_operand.vmem [shape: f32[2,3,14,14], index: 17, kind: output, shape index: {}]  }
   0x1   :  { %5819 = sst [smem:[#allocation3_spill]] %s5799_s0 }
   0x2   :  { %5820 = sst [smem:[#allocation4_spill]] %s5800_s1 }
   0x3 LB: > { %5821 = sst [smem:[#allocation2_spill]] %s4085_s24  ;;  %s3116_s25 = sadd.s32 4294967295, %s4085_s24   ;;  %s4085_s24 = sphi %s4186_s24, %s27_s24  }
   0x4   : > { %p3120_p0 = scmp.ge.s32.totalorder %s4085_s24, 1  ;;  %p487_p1 = scmp.lt.s32.totalorder %s4085_s24, 3 }
   0x6   : > { %p488_p2 = pnand %p3120_p0, %p487_p1 }
   0x7   : > { %s5822_s28 = sld [smem:[#allocation4_spill]] (!%p488_p2)  ;;  %v4087_v7 = vmov (!%p488_p2), 0.0   ;;  %p539_p3 = scmp.lt.s32.totalorder (!%p488_p2), %s3116_s25, 1  ;;  %vm631_vm0 = vcmask (!%p488_p2), 1045504   ;;  %vm612_vm1 = vcmask (!%p488_p2), 1046528   ;;  %vm622_vm2 = vcmask (!%p488_p2), 834560  }
   0x8   : > { %491 = sbr.rel (%p488_p2) target bundleno = 3083 (0xc0b), region = 88  ;;  %702 = vmatprep.mubr.f32.mxu0 (!%p488_p2), %v4087_v7  ;;  %1314 = vmatprep.mubr.f32.mxu1 (!%p488_p2), %v4087_v7  ;;  %s5823_s23 = sld [smem:[#allocation3_spill]] (!%p488_p2)  ;;  %vm1011_vm3 = vcmask (!%p488_p2), 261120   ;;  %vm4089_vm4 = vmmov (!%p488_p2), 0   ;;  %vm1555_vm5 = vcmask (!%p488_p2), 359424   ;;  %vm4091_vm6 = vmmov (!%p488_p2), 1  }
   0x9   : > { %s4090_s19 = smov (!%p488_p2), 44   ;;  %vm3708_vm7 = vmpackc.low (!%p488_p2), %vm631_vm0, %vm4091_vm6  ;;  %vm1563_vm8 = vcmask (!%p488_p2), 113664   ;;  %vm1765_vm9 = vcmask (!%p488_p2), 1043456   ;;  %vm1762_vm10 = vcmask (!%p488_p2), 687104   ;;  %vm2052_vm11 = vcmask (!%p488_p2), 1044480   ;;  %s4092_s20 = smov (!%p488_p2), 100  }
   0xa   : > { %vm2045_vm12 = vcmask (!%p488_p2), 39936   ;;  %vm2515_vm13 = vcmask (!%p488_p2), 64512   ;;  %vm2660_vm14 = vcmask (!%p488_p2), 523264   ;;  %s4093_s21 = smov (!%p488_p2), 114   ;;  %s4094_s22 = smov (!%p488_p2), 14   ;;  %vm3019_vm15 = vcmask (!%p488_p2), 111616  }
   0xd   : > { %v3124_v0 = vld [vmem:[%s5822_s28 + $0xd8] sm:$0xff] (!%p488_p2)  ;;  %v3126_v1 = vld [vmem:[%s5822_s28 + $0xe8] sm:$0xff] (!%p488_p2)  ;;  %v3123_v2 = vld [vmem:[%s5822_s28 + $0xd0] sm:$0xff] (!%p488_p2) }
   0xe   : > { %v3522_v3 = vpack.c.bf16 (!%p488_p2), %v3126_v1, %v3124_v0  ;;  %v3125_v4 = vld [vmem:[%s5822_s28 + $0xe0] sm:$0xff] (!%p488_p2)  ;;  %v3128_v5 = vld [vmem:[%s5822_s28 + $0xf8] sm:$0xff] (!%p488_p2)  ;;  %v3130_v6 = vld [vmem:[%s5822_s28 + $0x108] sm:$0xff] (!%p488_p2) }
   0xf   : > { %v3524_v8 = vpack.c.bf16 %v3125_v4, %v3123_v2  ;;  %v3526_v9 = vpack.c.bf16 %v3130_v6, %v3128_v5  ;;  %v3127_v10 = vld [vmem:[%s5822_s28 + $0xf0] sm:$0xff]  ;;  %v3129_v11 = vld [vmem:[%s5822_s28 + $0x100] sm:$0xff]  ;;  %v3132_v12 = vld [vmem:[%s5822_s28 + $0x118] sm:$0xff]  ;;  %s5826_s25 = smov (!%p539_p3, %s3116_s25), 1 }
  0x10   : > { %3523 = vmatprep.subr.bf16.mxu0 %v3522_v3  ;;  %v3134_v13 = vld [vmem:[%s5822_s28 + $0x128] sm:$0xff]  ;;  %v3528_v14 = vpack.c.bf16 %v3129_v11, %v3127_v10  ;;  %v3131_v16 = vld [vmem:[%s5822_s28 + $0x110] sm:$0xff]  ;;  %v3133_v17 = vld [vmem:[%s5822_s28 + $0x120] sm:$0xff]  ;;  %s4034_s26 = smul.u32 40, %s5826_s25 }
  0x11   : > { %3525 = vmatpush1.bf16.msra.mxu0 %v3524_v8  ;;  %v3530_v15 = vpack.c.bf16 %v3134_v13, %v3132_v12  ;;  %v3136_v18 = vld [vmem:[%s5822_s28 + $0x138] sm:$0xff]  ;;  %v3138_v19 = vld [vmem:[%s5822_s28 + $0x148] sm:$0xff]  ;;  %v3532_v20 = vpack.c.bf16 %v3133_v17, %v3131_v16  ;;  %v3135_v22 = vld [vmem:[%s5822_s28 + $0x130] sm:$0xff] }
  0x12   : > { %3527 = vmatprep.subr.bf16.mxu0 %v3526_v9  ;;  %v3534_v21 = vpack.c.bf16 %v3138_v19, %v3136_v18  ;;  %v3137_v23 = vld [vmem:[%s5822_s28 + $0x140] sm:$0xff]  ;;  %v3140_v24 = vld [vmem:[%s5822_s28 + $0x158] sm:$0xff]  ;;  %v3142_v25 = vld [vmem:[%s5822_s28 + $0x168] sm:$0xff]  ;;  %s4272_s24 = scalar_lea.vmem %s5823_s23, %s4034_s26  ;;  %s4095_s23 = smov 28  }
  0x13   : > { %v3536_v26 = vpack.c.bf16 %v3137_v23, %v3135_v22  ;;  %v3538_v27 = vpack.c.bf16 %v3142_v25, %v3140_v24  ;;  %v3139_v28 = vld [vmem:[%s5822_s28 + $0x150] sm:$0xff]  ;;  %v3141_v29 = vld [vmem:[%s5822_s28 + $0x160] sm:$0xff]  ;;  %v3144_v30 = vld [vmem:[%s5822_s28 + $0x178] sm:$0xff] }
  0x14   : > { %v3146_v31 = vld [vmem:[%s5822_s28 + $0x188] sm:$0xff]  ;;  %v3540_v32 = vpack.c.bf16 %v3141_v29, %v3139_v28  ;;  %v3143_v34 = vld [vmem:[%s5822_s28 + $0x170] sm:$0xff]  ;;  %v3145_v35 = vld [vmem:[%s5822_s28 + $0x180] sm:$0xff] }
  0x15   : > { %3529 = vmatpush1.bf16.msra.mxu0 %v3528_v14  ;;  %v3542_v33 = vpack.c.bf16 %v3146_v31, %v3144_v30  ;;  %v4281_v36 = vld [vmem:[%s4272_s24] sm:$0xff]  ;;  %v4284_v37 = vld [vmem:[%s4272_s24 + $0x8] sm:$0xff]  ;;  %v3544_v38 = vpack.c.bf16 %v3145_v35, %v3143_v34  ;;  %v3148_v39 = vld [vmem:[%s5822_s28 + $0x198] sm:$0x3f] }
  0x16   : > { %3531 = vmatprep.subr.bf16.mxu0 %v3530_v15  ;;  %v555_v40 = vld [vmem:[%s5822_s28 + $0x8] sm:$0xff]  ;;  %v557_v41 = vld [vmem:[%s5822_s28 + $0x18] sm:$0xff]  ;;  %v613_v42 = vrot.slane %v4281_v36, 1  ;;  %v614_v43 = vrot.slane %v4284_v37, 1  ;;  %v554_v44 = vld [vmem:[%s5822_s28] sm:$0xff] }
  0x17   : > { %v556_v45 = vld [vmem:[%s5822_s28 + $0x10] sm:$0xff]  ;;  %v559_v47 = vld [vmem:[%s5822_s28 + $0x28] sm:$0xff]  ;;  %v561_v48 = vld [vmem:[%s5822_s28 + $0x38] sm:$0xff]  ;;  %v3546_v50 = vpack.c.bf16 %v557_v41, %v555_v40 }
  0x18   : > { %v4304_v46 = vld [vmem:[%s4272_s24 + $0x10] sm:$0xff]  ;;  %v615_v51 = vsel %vm612_vm1, %v613_v42, %v614_v43  ;;  %v3548_v52 = vpack.c.bf16 %v556_v45, %v554_v44  ;;  %v3550_v54 = vpack.c.bf16 %v561_v48, %v559_v47  ;;  %v558_v55 = vld [vmem:[%s5822_s28 + $0x20] sm:$0xff]  ;;  %v4325_v57 = vld [vmem:[%s4272_s24 + $0x18] sm:$0xff] }
  0x19   : > { %3533 = vmatpush1.bf16.msra.mxu0 %v3532_v20  ;;  %v3147_v49 = vld [vmem:[%s5822_s28 + $0x190] sm:$0x3f]  ;;  %v616_v53 = vrot.slane %v4304_v46, 1  ;;  %v563_v58 = vld [vmem:[%s5822_s28 + $0x48] sm:$0xff]  ;;  %v565_v59 = vld [vmem:[%s5822_s28 + $0x58] sm:$0xff]  ;;  %v618_v62 = vrot.slane %v4325_v57, 1 }
  0x1a   : > { %3535 = vmatprep.subr.bf16.mxu0 %v3534_v21  ;;  %v560_v56 = vld [vmem:[%s5822_s28 + $0x30] sm:$0xff]  ;;  %v3554_v63 = vpack.c.bf16 %v565_v59, %v563_v58  ;;  %v562_v0 = vld [vmem:[%s5822_s28 + $0x40] sm:$0xff]  ;;  %v567_v3 = vld [vmem:[%s5822_s28 + $0x68] sm:$0xff] }
  0x1b   : > { %v3552_v60 = vpack.c.bf16 %v560_v56, %v558_v55  ;;  %v617_v61 = vsel %vm612_vm1, %v614_v43, %v616_v53  ;;  %v564_v1 = vld [vmem:[%s5822_s28 + $0x50] sm:$0xff]  ;;  %v4345_v2 = vld [vmem:[%s4272_s24 + $0x20] sm:$0x3]  ;;  %v569_v4 = vld [vmem:[%s5822_s28 + $0x78] sm:$0xff]  ;;  %v619_v6 = vsel %vm612_vm1, %v616_v53, %v618_v62  ;;  %s4035_s24 = smul.u32 48, %s5826_s25 }
  0x1c   : > { %v3556_v5 = vpack.c.bf16 %v564_v1, %v562_v0  ;;  %v620_v8 = vrot.slane %v4345_v2, 1  ;;  %v3558_v9 = vpack.c.bf16 %v569_v4, %v567_v3  ;;  %v566_v10 = vld [vmem:[%s5822_s28 + $0x60] sm:$0xff]  ;;  %v568_v11 = vld [vmem:[%s5822_s28 + $0x70] sm:$0xff]  ;;  %v571_v12 = vld [vmem:[%s5822_s28 + $0x88] sm:$0xff] }
  0x1d   : > { %3537 = vmatpush1.bf16.msra.mxu0 %v3536_v26  ;;  %v573_v13 = vld [vmem:[%s5822_s28 + $0x98] sm:$0xff]  ;;  %v3560_v14 = vpack.c.bf16 %v568_v11, %v566_v10  ;;  %v570_v17 = vld [vmem:[%s5822_s28 + $0x80] sm:$0xff]  ;;  %v572_v18 = vld [vmem:[%s5822_s28 + $0x90] sm:$0xff]  ;;  %v860_v11 = vrot.slane %v4304_v46, 2  ;;  %s548_s0 = scalar_lea.vmem %s5816_s17, %s4035_s24 }
  0x1e   : > { %3539 = vmatprep.subr.bf16.mxu0 %v3538_v27  ;;  %v621_v15 = vsel %vm612_vm1, %v618_v62, %v620_v8  ;;  %v3562_v16 = vpack.c.bf16 %v573_v13, %v571_v12  ;;  %v575_v19 = vld [vmem:[%s5822_s28 + $0xa8] sm:$0xff]  ;;  %v577_v20 = vld [vmem:[%s5822_s28 + $0xb8] sm:$0xff]  ;;  %v3564_v21 = vpack.c.bf16 %v572_v18, %v570_v17  ;;  %v574_v23 = vld [vmem:[%s5822_s28 + $0xa0] sm:$0xff]  ;;  %v864_v13 = vrot.slane %v4345_v2, 2 }
  0x1f   : > { %v3566_v22 = vpack.c.bf16 %v577_v20, %v575_v19  ;;  %v576_v24 = vld [vmem:[%s5822_s28 + $0xb0] sm:$0xff]  ;;  %v579_v26 = vld [vmem:[%s5822_s28 + $0xc8] sm:$0x3f]  ;;  %v3164_v28 = vld [vmem:[%s5822_s28 + $0x1b8] sm:$0xff] }
  0x20   : > { %v3568_v25 = vpack.c.bf16 %v576_v24, %v574_v23  ;;  %v3162_v27 = vld [vmem:[%s5822_s28 + $0x1a8] sm:$0xff]  ;;  %v3161_v29 = vld [vmem:[%s5822_s28 + $0x1a0] sm:$0xff]  ;;  %v3163_v30 = vld [vmem:[%s5822_s28 + $0x1b0] sm:$0xff] }
  0x21   : > { %3541 = vmatpush1.bf16.msra.mxu0 %v3540_v32  ;;  %v3166_v31 = vld [vmem:[%s5822_s28 + $0x1c8] sm:$0xff]  ;;  %v3168_v32 = vld [vmem:[%s5822_s28 + $0x1d8] sm:$0xff]  ;;  %v3570_v34 = vpack.c.bf16 %v3164_v28, %v3162_v27  ;;  %v3572_v35 = vpack.c.bf16 %v3163_v30, %v3161_v29  ;;  %v3167_v40 = vld [vmem:[%s5822_s28 + $0x1d0] sm:$0xff] }
  0x22   : > { %3543 = vmatprep.subr.bf16.mxu0 %v3542_v33  ;;  %v578_v33 = vld [vmem:[%s5822_s28 + $0xc0] sm:$0x3f]  ;;  %v3170_v41 = vld [vmem:[%s5822_s28 + $0x1e8] sm:$0xff]  ;;  %v3172_v42 = vld [vmem:[%s5822_s28 + $0x1f8] sm:$0xff] }
  0x23   : > { %v3578_v44 = vpack.c.bf16 %v3172_v42, %v3170_v41  ;;  %v3169_v45 = vld [vmem:[%s5822_s28 + $0x1e0] sm:$0xff]  ;;  %v3171_v47 = vld [vmem:[%s5822_s28 + $0x1f0] sm:$0xff]  ;;  %v3174_v48 = vld [vmem:[%s5822_s28 + $0x208] sm:$0xff] }
  0x24   : > { %v3175_v53 = vld [vmem:[%s5822_s28 + $0x210] sm:$0xff]  ;;  %v3180_v55 = vld [vmem:[%s5822_s28 + $0x238] sm:$0xff]  ;;  %v3177_v59 = vld [vmem:[%s5822_s28 + $0x220] sm:$0xff] }
  0x25   : > { %3545 = vmatpush1.bf16.msra.mxu0 %v3544_v38  ;;  %v3574_v38 = vpack.c.bf16 %v3168_v32, %v3166_v31  ;;  %v3184_v62 = vld [vmem:[%s5822_s28 + $0x258] sm:$0xff]  ;;  %v3181_v1 = vld [vmem:[%s5822_s28 + $0x240] sm:$0xff]  ;;  %v3183_v3 = vld [vmem:[%s5822_s28 + $0x250] sm:$0xff] }
  0x26   : > { %3149 = vmatprep.subr.msk.mxu0 %vm631_vm0, %v3148_v39  ;;  %v3165_v39 = vld [vmem:[%s5822_s28 + $0x1c0] sm:$0xff]  ;;  %v3592_v4 = vpack.c.bf16 %v3183_v3, %v3181_v1  ;;  %v3186_v8 = vld [vmem:[%s5822_s28 + $0x268] sm:$0x3f]  ;;  %v3200_v2 = vld [vmem:[%s5804_s5 + $0x118] sm:$0xff] }
  0x27   : > { %v3576_v43 = vpack.c.bf16 %v3167_v40, %v3165_v39  ;;  %v3199_v17 = vld [vmem:[%s5804_s5 + $0x110] sm:$0xff]  ;;  %v3202_v18 = vld [vmem:[%s5804_s5 + $0x128] sm:$0xff]  ;;  %v3204_v19 = vld [vmem:[%s5804_s5 + $0x138] sm:$0xff] }
  0x28   : > { %v3203_v23 = vld [vmem:[%s5804_s5 + $0x130] sm:$0xff]  ;;  %v3206_v24 = vld [vmem:[%s5804_s5 + $0x148] sm:$0xff]  ;;  %v3205_v28 = vld [vmem:[%s5804_s5 + $0x140] sm:$0xff] }
  0x29   : > { %3150 = vmatpush1.msk.msra.mxu0 %vm631_vm0, %v3147_v49  ;;  %v3176_v49 = vld [vmem:[%s5822_s28 + $0x218] sm:$0xff]  ;;  %v3207_v29 = vld [vmem:[%s5804_s5 + $0x150] sm:$0xff]  ;;  %v3210_v30 = vld [vmem:[%s5804_s5 + $0x168] sm:$0xff] }
  0x2a   : > { %3547 = vmatprep.subr.bf16.mxu0 %v3546_v50  ;;  %3151 = vmatmul.mubr.msk.f32.vlgmr.msra.gmra.mrb[0].mxu0 %vm622_vm2, %v615_v51  ;;  %v3580_v50 = vpack.c.bf16 %v3171_v47, %v3169_v45  ;;  %v3582_v51 = vpack.c.bf16 %v3176_v49, %v3174_v48  ;;  %v3212_v31 = vld [vmem:[%s5804_s5 + $0x178] sm:$0xff]  ;;  %v3620_v32 = vpack.c.bf16 %v3207_v29, %v3205_v28  ;;  %v3213_v42 = vld [vmem:[%s5804_s5 + $0x180] sm:$0xff]  ;;  %v979_v45 = vlaneseq }
  0x2b   : > { %3549 = vmatpush1.bf16.msra.mxu0 %v3548_v52  ;;  %708 = vmatprep.mubr.f32.mxu0 %v4087_v7  ;;  %v3173_v52 = vld [vmem:[%s5822_s28 + $0x200] sm:$0xff]  ;;  %v3216_v39 = vld [vmem:[%s5804_s5 + $0x198] sm:$0xff] }
  0x2c   : > { %3551 = vmatprep.subr.bf16.mxu0 %v3550_v54  ;;  %v3178_v54 = vld [vmem:[%s5822_s28 + $0x228] sm:$0xff]  ;;  %v3584_v56 = vpack.c.bf16 %v3175_v53, %v3173_v52  ;;  %v980_v47 = vshrl.u32 %v979_v45, 7  ;;  %v977_v49 = vld [vmem:[%s5801_s2] sm:$0x3] }
  0x2d   : > { %v3586_v58 = vpack.c.bf16 %v3180_v55, %v3178_v54  ;;  %v3221_v28 = vld [vmem:[%s5804_s5 + $0x1c0] sm:$0xff] }
  0x2e   : > { %3152 = vmatmul.mubr.msk.f32.gmra.mrb[2].mxu0 %vm622_vm2, %v617_v61  ;;  %v3182_v61 = vld [vmem:[%s5822_s28 + $0x248] sm:$0xff]  ;;  %v4572_v48 = vsub.s32 0, %v980_v47 }
  0x2f   : > { %3553 = vmatpush1.bf16.msra.mxu0 %v3552_v60  ;;  %714 = vmatprep.mubr.f32.mxu0 %v4087_v7  ;;  %v3179_v60 = vld [vmem:[%s5822_s28 + $0x230] sm:$0xff]  ;;  %v3590_v0 = vpack.c.bf16 %v3184_v62, %v3182_v61 }
  0x30   : > { %3555 = vmatprep.subr.bf16.mxu0 %v3554_v63  ;;  %v3588_v63 = vpack.c.bf16 %v3179_v60, %v3177_v59 }
  0x32   : > { %3153 = vmatmul.mubr.msk.f32.gmra.mrb[4].mxu0 %vm622_vm2, %v619_v6  ;;  %v858_v6 = vrot.slane %v4284_v37, 2 }
  0x33   : > { %3557 = vmatpush1.bf16.msra.mxu0 %v3556_v5  ;;  %720 = vmatprep.mubr.f32.mxu0 %v4087_v7  ;;  %v857_v5 = vrot.slane %v4281_v36, 2 }
  0x34   : > { %3559 = vmatprep.subr.bf16.mxu0 %v3558_v9  ;;  %v3185_v9 = vld [vmem:[%s5822_s28 + $0x260] sm:$0x3f] }
  0x35   : > { %v859_v10 = vsel %vm631_vm0, %v857_v5, %v858_v6 }
  0x36   : > { %3154 = vmatmul.mubr.msk.f32.gmra.mrb[6].mxu0 %vm622_vm2, %v621_v15  ;;  %v3197_v15 = vld [vmem:[%s5804_s5 + $0x100] sm:$0xff] }
  0x37   : > { %3561 = vmatpush1.bf16.msra.mxu0 %v3560_v14  ;;  %805 = vmatprep.mubr.f32.mxu0 %v4087_v7  ;;  %v3198_v14 = vld [vmem:[%s5804_s5 + $0x108] sm:$0xff]  ;;  %v3612_v20 = vpack.c.bf16 %v3199_v17, %v3197_v15 }
  0x38   : > { %3563 = vmatprep.subr.bf16.mxu0 %v3562_v16  ;;  %v3610_v16 = vpack.c.bf16 %v3200_v2, %v3198_v14  ;;  %v1010_v17 = vld [vmem:[%s5802_s3 + $0x8] sm:$0xff] }
  0x3a   : > { %3611 = vmatprep.subr.bf16.mxu1 %v3610_v16 }
  0x3b   : > { %3565 = vmatpush1.bf16.msra.mxu0 %v3564_v21  ;;  %v3614_v21 = vpack.c.bf16 %v3204_v19, %v3202_v18  ;;  %3613 = vmatpush1.bf16.msra.mxu1 %v3612_v20  ;;  %v1093_v18 = vld [vmem:[%s5803_s4] sm:$0xff]  ;;  %v1094_v19 = vld [vmem:[%s5803_s4 + $0x8] sm:$0xff] }
  0x3c   : > { %3567 = vmatprep.subr.bf16.mxu0 %v3566_v22  ;;  %v3201_v22 = vld [vmem:[%s5804_s5 + $0x120] sm:$0xff]  ;;  %v3218_v20 = vld [vmem:[%s5804_s5 + $0x1a8] sm:$0xff] }
  0x3d   : > { %3615 = vmatprep.subr.bf16.mxu1 %v3614_v21  ;;  %v3220_v21 = vld [vmem:[%s5804_s5 + $0x1b8] sm:$0xff] }
  0x3f   : > { %3569 = vmatpush1.bf16.msra.mxu0 %v3568_v25  ;;  %v3208_v25 = vld [vmem:[%s5804_s5 + $0x158] sm:$0xff] }
  0x40   : > { %3155 = vmatprep.subr.msk.mxu0 %vm631_vm0, %v579_v26  ;;  %v3616_v26 = vpack.c.bf16 %v3203_v23, %v3201_v22  ;;  %v3618_v27 = vpack.c.bf16 %v3208_v25, %v3206_v24  ;;  %v3630_v22 = vpack.c.bf16 %v3220_v21, %v3218_v20  ;;  %v3217_v23 = vld [vmem:[%s5804_s5 + $0x1a0] sm:$0xff]  ;;  %v3219_v24 = vld [vmem:[%s5804_s5 + $0x1b0] sm:$0xff] }
  0x41   : > { %v3632_v25 = vpack.c.bf16 %v3219_v24, %v3217_v23  ;;  %v1200_v23 = vld [vmem:[%s5804_s5 + $0xb0] sm:$0xff]  ;;  %v1203_v24 = vld [vmem:[%s5804_s5 + $0xc8] sm:$0xff] }
  0x42   : > { %3617 = vmatpush1.bf16.msra.mxu1 %v3616_v26  ;;  %v3222_v26 = vld [vmem:[%s5804_s5 + $0x1c8] sm:$0xff] }
  0x43   : > { %3156 = vmatpush1.msk.msra.mxu0 %vm631_vm0, %v578_v33  ;;  %3619 = vmatprep.subr.bf16.mxu1 %v3618_v27  ;;  %v3622_v33 = vpack.c.bf16 %v3212_v31, %v3210_v30  ;;  %v3224_v27 = vld [vmem:[%s5804_s5 + $0x1d8] sm:$0xff]  ;;  %v3223_v30 = vld [vmem:[%s5804_s5 + $0x1d0] sm:$0xff] }
  0x44   : > { %3571 = vmatprep.subr.bf16.mxu0 %v3570_v34  ;;  %3157 = vmatmul.mubr.msk.f32.vlgmr.msra.gmra.mrb[0].mxu0 %vm622_vm2, %v4281_v36  ;;  %v861_v36 = vsel %vm631_vm0, %v858_v6, %v860_v11  ;;  %v3209_v34 = vld [vmem:[%s5804_s5 + $0x160] sm:$0xff]  ;;  %v3634_v29 = vpack.c.bf16 %v3224_v27, %v3222_v26  ;;  %v3636_v31 = vpack.c.bf16 %v3223_v30, %v3221_v28  ;;  %v1207_v30 = vld [vmem:[%s5804_s5 + $0xe8] sm:$0xff] }
  0x45   : > { %3573 = vmatpush1.bf16.msra.mxu0 %v3572_v35  ;;  %811 = vmatprep.mubr.f32.mxu0 %v4087_v7  ;;  %v3211_v35 = vld [vmem:[%s5804_s5 + $0x170] sm:$0xff]  ;;  %v1202_v28 = vld [vmem:[%s5804_s5 + $0xc0] sm:$0xff] }
  0x46   : > { %3575 = vmatprep.subr.bf16.mxu0 %v3574_v38  ;;  %v3214_v38 = vld [vmem:[%s5804_s5 + $0x188] sm:$0xff]  ;;  %3621 = vmatpush1.bf16.msra.mxu1 %v3620_v32  ;;  %v3624_v40 = vpack.c.bf16 %v3211_v35, %v3209_v34  ;;  %v3225_v35 = vld [vmem:[%s5804_s5 + $0x1e0] sm:$0xff] }
  0x47   : > { %3623 = vmatprep.subr.bf16.mxu1 %v3622_v33  ;;  %v3626_v41 = vpack.c.bf16 %v3216_v39, %v3214_v38  ;;  %v3226_v32 = vld [vmem:[%s5804_s5 + $0x1e8] sm:$0xff]  ;;  %v3228_v33 = vld [vmem:[%s5804_s5 + $0x1f8] sm:$0xff]  ;;  %v3227_v38 = vld [vmem:[%s5804_s5 + $0x1f0] sm:$0xff] }
  0x48   : > { %3158 = vmatmul.mubr.msk.f32.gmra.mrb[2].mxu0 %vm622_vm2, %v4284_v37  ;;  %v862_v37 = vrot.slane %v4325_v57, 2  ;;  %v3638_v34 = vpack.c.bf16 %v3228_v33, %v3226_v32  ;;  %v3640_v39 = vpack.c.bf16 %v3227_v38, %v3225_v35  ;;  %v1208_v35 = vld [vmem:[%s5804_s5 + $0xf0] sm:$0xff]  ;;  %v3230_v38 = vld [vmem:[%s5804_s5 + $0x208] sm:$0xff] }
  0x49   : > { %3577 = vmatpush1.bf16.msra.mxu0 %v3576_v43  ;;  %817 = vmatprep.mubr.f32.mxu0 %v4087_v7  ;;  %v3215_v43 = vld [vmem:[%s5804_s5 + $0x190] sm:$0xff] }
  0x4a   : > { %3579 = vmatprep.subr.bf16.mxu0 %v3578_v44  ;;  %v863_v12 = vsel %vm631_vm0, %v860_v11, %v862_v37  ;;  %3625 = vmatpush1.bf16.msra.mxu1 %v3624_v40  ;;  %v3628_v44 = vpack.c.bf16 %v3215_v43, %v3213_v42  ;;  %v1179_v40 = vld [vmem:[%s5804_s5 + $0x8] sm:$0xff] }
  0x4b   : > { %3627 = vmatprep.subr.bf16.mxu1 %v3626_v41  ;;  %v1181_v41 = vld [vmem:[%s5804_s5 + $0x18] sm:$0xff] }
  0x4c   : > { %3159 = vmatmul.mubr.msk.f32.gmra.mrb[4].mxu0 %vm622_vm2, %v4304_v46  ;;  %v865_v46 = vsel %vm631_vm0, %v862_v37, %v864_v13  ;;  %v3642_v42 = vpack.c.bf16 %v1181_v41, %v1179_v40 }
  0x4d   : > { %3581 = vmatpush1.bf16.msra.mxu0 %v3580_v50  ;;  %823 = vmatprep.mubr.f32.mxu0 %v4087_v7  ;;  %v4577_v50 = vsub.s32 1, %v980_v47 }
  0x4e   : > { %3583 = vmatprep.subr.bf16.mxu0 %v3582_v51  ;;  %3629 = vmatpush1.bf16.msra.mxu1 %v3628_v44  ;;  %v982_v51 = vrot.slane %v977_v49, %v4572_v48 }
  0x4f   : > { %v986_v52 = vrot.slane %v977_v49, %v4577_v50  ;;  %3631 = vmatprep.subr.bf16.mxu1 %v3630_v22  ;;  %v1198_v22 = vld [vmem:[%s5804_s5 + $0xa0] sm:$0xff] }
  0x50   : > { %3160 = vmatmul.mubr.msk.f32.gmra.mrb[6].mxu0 %vm622_vm2, %v4325_v57  ;;  %v1009_v57 = vld [vmem:[%s5802_s3] sm:$0xff]  ;;  %v3664_v26 = vpack.c.bf16 %v1200_v23, %v1198_v22 }
  0x51   : > { %3585 = vmatpush1.bf16.msra.mxu0 %v3584_v56  ;;  %944 = vmatprep.mubr.f32.mxu0 %v4087_v7 }
  0x52   : > { %3587 = vmatprep.subr.bf16.mxu0 %v3586_v58  ;;  %3633 = vmatpush1.bf16.msra.mxu1 %v3632_v25  ;;  %v1205_v25 = vld [vmem:[%s5804_s5 + $0xd8] sm:$0xff] }
  0x53   : > { %3635 = vmatprep.subr.bf16.mxu1 %v3634_v29  ;;  %v3666_v27 = vpack.c.bf16 %v1205_v25, %v1203_v24  ;;  %v1204_v29 = vld [vmem:[%s5804_s5 + $0xd0] sm:$0xff]  ;;  %v3257_v24 = vld [vmem:[%s5804_s5 + $0x2e0] sm:$0xff] }
  0x54   : > { %v3668_v32 = vpack.c.bf16 %v1204_v29, %v1202_v28  ;;  %v3259_v25 = vld [vmem:[%s5804_s5 + $0x2f0] sm:$0xff] }
  0x55   : > { %3589 = vmatpush1.bf16.msra.mxu0 %v3588_v63 }
  0x56   : > { %3591 = vmatprep.subr.bf16.mxu0 %v3590_v0  ;;  %3637 = vmatpush1.bf16.msra.mxu1 %v3636_v31  ;;  %v1209_v31 = vld [vmem:[%s5804_s5 + $0xf8] sm:$0xff] }
  0x57   : > { %3639 = vmatprep.subr.bf16.mxu1 %v3638_v34  ;;  %v3670_v33 = vpack.c.bf16 %v1209_v31, %v1207_v30  ;;  %v1206_v34 = vld [vmem:[%s5804_s5 + $0xe0] sm:$0xff] }
  0x58   : > { %v3672_v40 = vpack.c.bf16 %v1208_v35, %v1206_v34 }
  0x59   : > { %3593 = vmatpush1.bf16.msra.mxu0 %v3592_v4 }
  0x5a   : > { %3187 = vmatprep.subr.msk.mxu0 %vm631_vm0, %v3186_v8  ;;  %3641 = vmatpush1.bf16.msra.mxu1 %v3640_v39  ;;  %v3232_v39 = vld [vmem:[%s5804_s5 + $0x218] sm:$0xff] }
  0x5b   : > { %3643 = vmatprep.subr.bf16.mxu1 %v3642_v42  ;;  %v3674_v41 = vpack.c.bf16 %v3232_v39, %v3230_v38  ;;  %v3229_v42 = vld [vmem:[%s5804_s5 + $0x200] sm:$0xff] }
  0x5d   : > { %3188 = vmatpush1.msk.msra.mxu0 %vm631_vm0, %v3185_v9 }
  0x5e   : > { %3189 = vmatmul.mubr.msk.f32.vlgmr.msra.gmra.mrb[0].mxu0 %vm622_vm2, %v859_v10 }
  0x5f   : > { %950 = vmatprep.mubr.f32.mxu0 %v4087_v7 }
  0x62   : > { %3190 = vmatmul.mubr.msk.f32.gmra.mrb[2].mxu0 %vm622_vm2, %v861_v36 }
  0x63   : > { %956 = vmatprep.mubr.f32.mxu0 %v4087_v7 }
  0x66   : > { %3191 = vmatmul.mubr.msk.f32.gmra.mrb[4].mxu0 %vm622_vm2, %v863_v12 }
  0x67   : > { %962 = vmatprep.mubr.f32.mxu0 %v4087_v7 }
  0x6a   : > { %3192 = vmatmul.mubr.msk.f32.gmra.mrb[6].mxu0 %vm622_vm2, %v865_v46 }
  0x6b   : > { %3494 = vmatprep.mubr.msk.f32.mxu0 %vm1011_vm3, %v1009_v57 }
 0x131   : > { %v946_v53 = vpop.f32.mrb[0].mxu0 }
 0x132   : > { %v989_v54 = vadd.f32 %v982_v51, %v946_v53  ;;  %v948_v55 = vpop.f32.mrb[1].mxu0 }
 0x133   : > { %v990_v56 = vadd.f32 %v986_v52, %v948_v55  ;;  %v1185_v55 = vld [vmem:[%s5804_s5 + $0x38] sm:$0xff] }
 0x134   : > { %v997_v58 = vmax.f32 %v989_v54, 0.0  ;;  %v1183_v54 = vld [vmem:[%s5804_s5 + $0x28] sm:$0xff] }
 0x135   : > { %v998_v59 = vmax.f32 %v990_v56, 0.0  ;;  %v952_v60 = vpop.f32.mrb[2].mxu0 }
 0x136   : > { %v991_v61 = vadd.f32 %v982_v51, %v952_v60  ;;  %v954_v62 = vpop.f32.mrb[3].mxu0 }
 0x137   : > { %v1005_v63 = vmax.f32 %v997_v58, %v998_v59  ;;  %v992_v0 = vadd.f32 %v986_v52, %v954_v62  ;;  %v3646_v62 = vpack.c.bf16 %v1185_v55, %v1183_v54  ;;  %v3235_v54 = vld [vmem:[%s5804_s5 + $0x230] sm:$0xff]  ;;  %v3238_v55 = vld [vmem:[%s5804_s5 + $0x248] sm:$0xff] }
 0x138   : > { %v999_v1 = vmax.f32 %v991_v61, 0.0 }
 0x139   : > { %v1000_v3 = vmax.f32 %v992_v0, 0.0  ;;  %v958_v4 = vpop.f32.mrb[4].mxu0  ;;  %v1184_v0 = vld [vmem:[%s5804_s5 + $0x30] sm:$0xff] }
 0x13a   : > { %v993_v5 = vadd.f32 %v982_v51, %v958_v4  ;;  %v960_v6 = vpop.f32.mrb[5].mxu0  ;;  %v1189_v4 = vld [vmem:[%s5804_s5 + $0x58] sm:$0xff] }
 0x13b   : > { %v1006_v8 = vmax.f32 %v999_v1, %v1000_v3  ;;  %v994_v9 = vadd.f32 %v986_v52, %v960_v6  ;;  %v1187_v3 = vld [vmem:[%s5804_s5 + $0x48] sm:$0xff] }
 0x13c   : > { %v1001_v10 = vmax.f32 %v993_v5, 0.0 }
 0x13d   : > { %v3594_v11 = vpack.c.bf16 %v1006_v8, %v1005_v63  ;;  %v1002_v36 = vmax.f32 %v994_v9, 0.0  ;;  %v964_v37 = vpop.f32.mrb[6].mxu0  ;;  %v1182_v63 = vld [vmem:[%s5804_s5 + $0x20] sm:$0xff]  ;;  %v3650_v8 = vpack.c.bf16 %v1189_v4, %v1187_v3  ;;  %v3243_v4 = vld [vmem:[%s5804_s5 + $0x270] sm:$0xff] }
 0x13e   : > { %v995_v12 = vadd.f32 %v982_v51, %v964_v37  ;;  %v966_v13 = vpop.f32.mrb[7].mxu0  ;;  %v1178_v51 = vld [vmem:[%s5804_s5] sm:$0xff]  ;;  %v3648_v6 = vpack.c.bf16 %v1184_v0, %v1182_v63  ;;  %v3242_v63 = vld [vmem:[%s5804_s5 + $0x268] sm:$0xff] }
 0x13f   : > { %v1007_v46 = vmax.f32 %v1001_v10, %v1002_v36  ;;  %v996_v57 = vadd.f32 %v986_v52, %v966_v13  ;;  %3595 = vmatprep.subr.bf16.mxu0 %v3594_v11  ;;  %v1180_v52 = vld [vmem:[%s5804_s5 + $0x10] sm:$0xff]  ;;  %v1186_v9 = vld [vmem:[%s5804_s5 + $0x40] sm:$0xff]  ;;  %v1193_v36 = vld [vmem:[%s5804_s5 + $0x78] sm:$0xff] }
 0x140   : > { %v1003_v14 = vmax.f32 %v995_v12, 0.0  ;;  %3597 = vmatpush3.bf16.msra.mxu0 %v3594_v11  ;;  %v3644_v61 = vpack.c.bf16 %v1180_v52, %v1178_v51  ;;  %v1188_v10 = vld [vmem:[%s5804_s5 + $0x50] sm:$0xff]  ;;  %v1190_v13 = vld [vmem:[%s5804_s5 + $0x60] sm:$0xff] }
 0x141   : > { %v1004_v2 = vmax.f32 %v996_v57, 0.0  ;;  %v3652_v37 = vpack.c.bf16 %v1188_v10, %v1186_v9  ;;  %v1195_v57 = vld [vmem:[%s5804_s5 + $0x88] sm:$0xff]  ;;  %v3233_v52 = vld [vmem:[%s5804_s5 + $0x220] sm:$0xff] }
 0x142   : > { %v3241_v3 = vld [vmem:[%s5804_s5 + $0x260] sm:$0xff] }
 0x143   : > { %v1008_v15 = vmax.f32 %v1003_v14, %v1004_v2  ;;  %v1197_v14 = vld [vmem:[%s5804_s5 + $0x98] sm:$0xff]  ;;  %v3688_v9 = vpack.c.bf16 %v3243_v4, %v3241_v3  ;;  %v3267_v3 = vld [vmem:[%s5808_s9 + $0xc0] sm:$0xff] }
 0x144   : > { %v3270_v4 = vld [vmem:[%s5808_s9 + $0xd8] sm:$0xff] }
 0x145   : > { %v3598_v16 = vpack.c.bf16 %v1008_v15, %v1007_v46  ;;  %v1192_v46 = vld [vmem:[%s5804_s5 + $0x70] sm:$0xff]  ;;  %v3658_v15 = vpack.c.bf16 %v1197_v14, %v1195_v57  ;;  %v3249_v57 = vld [vmem:[%s5804_s5 + $0x2a0] sm:$0xff] }
 0x146   : > { %v3656_v2 = vpack.c.bf16 %v1192_v46, %v1190_v13  ;;  %v3251_v14 = vld [vmem:[%s5804_s5 + $0x2b0] sm:$0xff] }
 0x147   : > { %3599 = vmatprep.subr.bf16.mxu0 %v3598_v16 }
 0x148   : > { %3601 = vmatpush3.bf16.msra.mxu0 %v3598_v16 }
 0x149   : > { %3603 = vmatprep.subr.bf16.mxu0 %v3594_v11 }
 0x14b   : > { %3495 = vmatmul.mubr.msk.f32.vlgmr.msra.gmra.mrb[8].mxu0 %vm1011_vm3, %v1010_v17  ;;  %v1196_v17 = vld [vmem:[%s5804_s5 + $0x90] sm:$0xff] }
 0x14c   : > { %3605 = vmatpush3.bf16.msra.mxu0 %v3594_v11  ;;  %3505 = vmatprep.mubr.msk.f32.mxu0 %vm1011_vm3, %v1093_v18  ;;  %v1191_v11 = vld [vmem:[%s5804_s5 + $0x68] sm:$0xff] }
 0x14d   : > { %3607 = vmatprep.subr.bf16.mxu0 %v3598_v16  ;;  %v3654_v12 = vpack.c.bf16 %v1193_v36, %v1191_v11  ;;  %v1199_v18 = vld [vmem:[%s5804_s5 + $0xa8] sm:$0xff]  ;;  %v3245_v11 = vld [vmem:[%s5804_s5 + $0x280] sm:$0xff]  ;;  %v3247_v36 = vld [vmem:[%s5804_s5 + $0x290] sm:$0xff] }
 0x14e   : > { %v3692_v13 = vpack.c.bf16 %v3247_v36, %v3245_v11  ;;  %v3269_v11 = vld [vmem:[%s5808_s9 + $0xd0] sm:$0xff]  ;;  %v3271_v36 = vld [vmem:[%s5808_s9 + $0xe0] sm:$0xff] }
 0x150   : > { %3609 = vmatpush3.bf16.msra.mxu0 %v3598_v16  ;;  %v1194_v16 = vld [vmem:[%s5804_s5 + $0x80] sm:$0xff] }
 0x151   : > { %v3660_v20 = vpack.c.bf16 %v1196_v17, %v1194_v16  ;;  %v3696_v16 = vpack.c.bf16 %v3251_v14, %v3249_v57  ;;  %v3273_v57 = vld [vmem:[%s5808_s9 + $0xf0] sm:$0xff]  ;;  %v3275_v14 = vld [vmem:[%s5808_s9 + $0x100] sm:$0xff] }
 0x153   : > { %3506 = vmatmul.mubr.msk.f32.vlgmr.msra.gmra.mrb[10].mxu0 %vm1011_vm3, %v1094_v19  ;;  %v1201_v19 = vld [vmem:[%s5804_s5 + $0xb8] sm:$0xff] }
 0x154   : > { %v3662_v21 = vpack.c.bf16 %v1201_v19, %v1199_v18  ;;  %v3253_v18 = vld [vmem:[%s5804_s5 + $0x2c0] sm:$0xff]  ;;  %v3255_v19 = vld [vmem:[%s5804_s5 + $0x2d0] sm:$0xff]  ;;  %3512 = vmatprep.mubr.msk.f32.mxu0 %vm4089_vm4, %v4087_v7 }
 0x155   : > { %v3700_v22 = vpack.c.bf16 %v3255_v19, %v3253_v18  ;;  %v3277_v18 = vld [vmem:[%s5808_s9 + $0x110] sm:$0xff]  ;;  %v3279_v19 = vld [vmem:[%s5808_s9 + $0x120] sm:$0xff] }
 0x21e   : > { %v3496_v43 = vpop.f32.mrb[8].mxu0 }
 0x21f   : > { %v1084_v44 = vpop.f32.mrb[9].mxu0 }
 0x226   : > { %v3507_v45 = vpop.f32.mrb[10].mxu0 }
 0x227   : > { %v4635_v47 = vmax.f32 %v3496_v43, %v3507_v45  ;;  %v1167_v49 = vpop.f32.mrb[11].mxu0  ;;  %v3231_v43 = vld [vmem:[%s5804_s5 + $0x210] sm:$0xff]  ;;  %v3236_v45 = vld [vmem:[%s5804_s5 + $0x238] sm:$0xff] }
 0x228   : > { %v4643_v53 = vmax.f32 %v1084_v44, %v1167_v49  ;;  %v3234_v44 = vld [vmem:[%s5804_s5 + $0x228] sm:$0xff]  ;;  %v3676_v49 = vpack.c.bf16 %v3231_v43, %v3229_v42 }
 0x229   : > { %v1246_v56 = vrot.slane %v4635_v47, 1  ;;  %v1438_v58 = vrot.slane %v4635_v47, 2  ;;  %v3678_v51 = vpack.c.bf16 %v3236_v45, %v3234_v44 }
 0x22a   : > { %v1245_v59 = vrot.slane %v4643_v53, 1  ;;  %v1437_v60 = vrot.slane %v4643_v53, 2 }
 0x22c   : > { %v1247_v1 = vsel %vm612_vm1, %v1245_v59, %v1246_v56  ;;  %v4671_v5 = vsel %vm631_vm0, %v1437_v60, %v1438_v58  ;;  %v3680_v59 = vpack.c.bf16 %v3235_v54, %v3233_v52 }
 0x22d   : > { %1315 = vmatmul.mubr.f32.vlgmr.msra.gmra.mrb[0].mxu1 %v1247_v1 }
 0x22e   : > { %3645 = vmatpush1.bf16.msra.mxu1 %v3644_v61  ;;  %1320 = vmatprep.mubr.f32.mxu1 %v4087_v7  ;;  %v3237_v61 = vld [vmem:[%s5804_s5 + $0x240] sm:$0xff] }
 0x22f   : > { %3647 = vmatprep.subr.bf16.mxu1 %v3646_v62  ;;  %v3239_v62 = vld [vmem:[%s5804_s5 + $0x250] sm:$0xff] }
 0x230   : > { %v3684_v0 = vpack.c.bf16 %v3239_v62, %v3237_v61  ;;  %v3266_v62 = vld [vmem:[%s5808_s9 + $0xb8] sm:$0xff] }
 0x231   : > { %1321 = vmatmul.mubr.f32.gmra.mrb[2].mxu1 %v1246_v56  ;;  %v3240_v56 = vld [vmem:[%s5804_s5 + $0x258] sm:$0xff] }
 0x232   : > { %3649 = vmatpush1.bf16.msra.mxu1 %v3648_v6  ;;  %1391 = vmatprep.mubr.f32.mxu1 %v4087_v7  ;;  %v3682_v60 = vpack.c.bf16 %v3240_v56, %v3238_v55  ;;  %v3246_v6 = vld [vmem:[%s5804_s5 + $0x288] sm:$0xff] }
 0x233   : > { %3651 = vmatprep.subr.bf16.mxu1 %v3650_v8  ;;  %v3248_v8 = vld [vmem:[%s5804_s5 + $0x298] sm:$0xff] }
 0x234   : > { %v3690_v10 = vpack.c.bf16 %v3248_v8, %v3246_v6  ;;  %v3272_v6 = vld [vmem:[%s5808_s9 + $0xe8] sm:$0xff]  ;;  %v1640_v8 = vld [vmem:[%s5807_s8] sm:$0x7f] }
 0x236   : > { %3653 = vmatpush1.bf16.msra.mxu1 %v3652_v37  ;;  %v3250_v37 = vld [vmem:[%s5804_s5 + $0x2a8] sm:$0xff] }
 0x237   : > { %3655 = vmatprep.subr.bf16.mxu1 %v3654_v12  ;;  %v3252_v12 = vld [vmem:[%s5804_s5 + $0x2b8] sm:$0xff] }
 0x238   : > { %v3694_v46 = vpack.c.bf16 %v3252_v12, %v3250_v37  ;;  %v3274_v37 = vld [vmem:[%s5808_s9 + $0xf8] sm:$0xff]  ;;  %v3276_v12 = vld [vmem:[%s5808_s9 + $0x108] sm:$0xff] }
 0x23a   : > { %3657 = vmatpush1.bf16.msra.mxu1 %v3656_v2  ;;  %v3254_v2 = vld [vmem:[%s5804_s5 + $0x2c8] sm:$0xff] }
 0x23b   : > { %3659 = vmatprep.subr.bf16.mxu1 %v3658_v15  ;;  %v3256_v15 = vld [vmem:[%s5804_s5 + $0x2d8] sm:$0xff] }
 0x23c   : > { %v3698_v17 = vpack.c.bf16 %v3256_v15, %v3254_v2  ;;  %v3278_v2 = vld [vmem:[%s5808_s9 + $0x118] sm:$0xff]  ;;  %v3280_v15 = vld [vmem:[%s5808_s9 + $0x128] sm:$0xff] }
 0x23e   : > { %3661 = vmatpush1.bf16.msra.mxu1 %v3660_v20  ;;  %v3258_v20 = vld [vmem:[%s5804_s5 + $0x2e8] sm:$0xff] }
 0x23f   : > { %3663 = vmatprep.subr.bf16.mxu1 %v3662_v21  ;;  %v3260_v21 = vld [vmem:[%s5804_s5 + $0x2f8] sm:$0xff] }
 0x240   : > { %v3702_v23 = vpack.c.bf16 %v3260_v21, %v3258_v20  ;;  %v3728_v20 = vpack.c.bf16 %v3279_v19, %v3277_v18  ;;  %v3282_v21 = vld [vmem:[%s5808_s9 + $0x138] sm:$0xff]  ;;  %v3302_v18 = vld [vmem:[%s5808_s9 + $0x1a8] sm:$0xff] }
 0x241   : > { %v3304_v19 = vld [vmem:[%s5808_s9 + $0x1b8] sm:$0xff] }
 0x242   : > { %3665 = vmatpush1.bf16.msra.mxu1 %v3664_v26  ;;  %v3704_v26 = vpack.c.bf16 %v3259_v25, %v3257_v24  ;;  %v3281_v24 = vld [vmem:[%s5808_s9 + $0x130] sm:$0xff]  ;;  %v3283_v25 = vld [vmem:[%s5808_s9 + $0x140] sm:$0xff] }
 0x243   : > { %3667 = vmatprep.subr.bf16.mxu1 %v3666_v27  ;;  %v1523_v27 = vld [vmem:[%s5805_s6] sm:$0x3] }
 0x244   : > { %v1528_v28 = vrot.slane %v1523_v27, %v4572_v48  ;;  %v1532_v29 = vrot.slane %v1523_v27, %v4577_v50  ;;  %v3286_v27 = vld [vmem:[%s5808_s9 + $0x158] sm:$0xf] }
 0x246   : > { %3669 = vmatpush1.bf16.msra.mxu1 %v3668_v32 }
 0x247   : > { %3671 = vmatprep.subr.bf16.mxu1 %v3670_v33 }
 0x24a   : > { %3673 = vmatpush1.bf16.msra.mxu1 %v3672_v40 }
 0x24b   : > { %3675 = vmatprep.subr.bf16.mxu1 %v3674_v41 }
 0x24d   : > { %1392 = vmatmul.mubr.f32.vlgmr.msra.gmra.mrb[0].mxu1 %v4643_v53  ;;  %v3244_v53 = vld [vmem:[%s5804_s5 + $0x278] sm:$0xff] }
 0x24e   : > { %3677 = vmatpush1.bf16.msra.mxu1 %v3676_v49  ;;  %1397 = vmatprep.mubr.f32.mxu1 %v4087_v7  ;;  %v3686_v1 = vpack.c.bf16 %v3244_v53, %v3242_v63  ;;  %v3268_v63 = vld [vmem:[%s5808_s9 + $0xc8] sm:$0xff]  ;;  %v1562_v53 = vld [vmem:[%s5806_s7] sm:$0x7f] }
 0x24f   : > { %3679 = vmatprep.subr.bf16.mxu1 %v3678_v51 }
 0x251   : > { %1398 = vmatmul.mubr.f32.gmra.mrb[2].mxu1 %v4635_v47 }
 0x252   : > { %3681 = vmatpush1.bf16.msra.mxu1 %v3680_v59  ;;  %1506 = vmatprep.mubr.f32.mxu1 %v4087_v7 }
 0x253   : > { %3683 = vmatprep.subr.bf16.mxu1 %v3682_v60 }
 0x256   : > { %3685 = vmatpush1.bf16.msra.mxu1 %v3684_v0  ;;  %v3714_v0 = vpack.c.bf16 %v3268_v63, %v3266_v62  ;;  %v1727_v63 = vld [vmem:[%s5808_s9 + $0x60] sm:$0xff] }
 0x257   : > { %3687 = vmatprep.subr.bf16.mxu1 %v3686_v1  ;;  %v3265_v1 = vld [vmem:[%s5808_s9 + $0xb0] sm:$0xff] }
 0x25a   : > { %3689 = vmatpush1.bf16.msra.mxu1 %v3688_v9  ;;  %v3716_v9 = vpack.c.bf16 %v3267_v3, %v3265_v1  ;;  %v1734_v1 = vld [vmem:[%s5808_s9 + $0x98] sm:$0xff] }
 0x25b   : > { %3691 = vmatprep.subr.bf16.mxu1 %v3690_v10  ;;  %v3718_v10 = vpack.c.bf16 %v3272_v6, %v3270_v4  ;;  %v1731_v6 = vld [vmem:[%s5808_s9 + $0x80] sm:$0xff] }
 0x25e   : > { %3693 = vmatpush1.bf16.msra.mxu1 %v3692_v13  ;;  %v3720_v13 = vpack.c.bf16 %v3271_v36, %v3269_v11  ;;  %v3294_v11 = vld [vmem:[%s5808_s9 + $0x168] sm:$0xff]  ;;  %v3296_v36 = vld [vmem:[%s5808_s9 + $0x178] sm:$0xff] }
 0x25f   : > { %3695 = vmatprep.subr.bf16.mxu1 %v3694_v46  ;;  %v3722_v46 = vpack.c.bf16 %v3276_v12, %v3274_v37  ;;  %v3293_v37 = vld [vmem:[%s5808_s9 + $0x160] sm:$0xff]  ;;  %v3295_v12 = vld [vmem:[%s5808_s9 + $0x170] sm:$0xff] }
 0x262   : > { %3697 = vmatpush1.bf16.msra.mxu1 %v3696_v16  ;;  %v3724_v16 = vpack.c.bf16 %v3275_v14, %v3273_v57  ;;  %v1735_v57 = vld [vmem:[%s5808_s9 + $0xa0] sm:$0xf]  ;;  %v3754_v14 = vpack.c.bf16 %v3296_v36, %v3294_v11  ;;  %v3332_v36 = vld [vmem:[%s5811_s12 + $0x190] sm:$0xff] }
 0x263   : > { %3699 = vmatprep.subr.bf16.mxu1 %v3698_v17  ;;  %v3726_v17 = vpack.c.bf16 %v3280_v15, %v3278_v2  ;;  %v3756_v2 = vpack.c.bf16 %v3295_v12, %v3293_v37  ;;  %v3330_v11 = vld [vmem:[%s5811_s12 + $0x180] sm:$0xff]  ;;  %v3335_v37 = vld [vmem:[%s5811_s12 + $0x1a8] sm:$0xff]  ;;  %v3337_v12 = vld [vmem:[%s5811_s12 + $0x1b8] sm:$0xff] }
 0x266   : > { %3701 = vmatpush1.bf16.msra.mxu1 %v3700_v22  ;;  %v3284_v22 = vld [vmem:[%s5808_s9 + $0x148] sm:$0xff] }
 0x267   : > { %3703 = vmatprep.subr.bf16.mxu1 %v3702_v23  ;;  %v3730_v23 = vpack.c.bf16 %v3284_v22, %v3282_v21  ;;  %v3762_v21 = vpack.c.bf16 %v3304_v19, %v3302_v18  ;;  %v3301_v22 = vld [vmem:[%s5808_s9 + $0x1a0] sm:$0xff]  ;;  %v3340_v19 = vld [vmem:[%s5811_s12 + $0x1d0] sm:$0xff] }
 0x268   : > { %v3338_v18 = vld [vmem:[%s5811_s12 + $0x1c0] sm:$0xff] }
 0x26a   : > { %3705 = vmatpush1.bf16.msra.mxu1 %v3704_v26  ;;  %v3732_v26 = vpack.c.bf16 %v3283_v25, %v3281_v24  ;;  %v3306_v24 = vld [vmem:[%s5808_s9 + $0x1c8] sm:$0xff]  ;;  %v3308_v25 = vld [vmem:[%s5808_s9 + $0x1d8] sm:$0xff] }
 0x26d   : > { %1507 = vmatmul.mubr.f32.vlgmr.msra.gmra.mrb[0].mxu1 %v4671_v5 }
 0x26e   : > { %1512 = vmatprep.mubr.f32.mxu1 %v4087_v7 }
 0x271   : > { %1513 = vmatmul.mubr.f32.gmra.mrb[2].mxu1 %v1438_v58  ;;  %v4088_v58 = vmov 0.0|0.0  }
 0x272   : > { %2123 = vmatprep.mubr.f32.mxu1 %v4087_v7  ;;  %3706 = vmatprep.subr.bf16.mxu0 %v4088_v58 }
 0x340   : > { %v1508_v30 = vpop.f32.mrb[0].mxu1 }
 0x341   : > { %v1535_v31 = vadd.f32 %v1528_v28, %v1508_v30  ;;  %v1510_v32 = vpop.f32.mrb[1].mxu1  ;;  %v3285_v30 = vld [vmem:[%s5808_s9 + $0x150] sm:$0xf] }
 0x342   : > { %v1536_v33 = vadd.f32 %v1532_v29, %v1510_v32 }
 0x343   : > { %v1539_v5 = vmax.f32 %v1535_v31, 0.0 }
 0x344   : > { %v1540_v34 = vmax.f32 %v1536_v33, 0.0  ;;  %v1514_v35 = vpop.f32.mrb[2].mxu1 }
 0x345   : > { %v1537_v38 = vadd.f32 %v1528_v28, %v1514_v35  ;;  %v1516_v47 = vpop.f32.mrb[3].mxu1  ;;  %v1716_v28 = vld [vmem:[%s5808_s9 + $0x8] sm:$0xff] }
 0x346   : > { %v1538_v39 = vadd.f32 %v1532_v29, %v1516_v47  ;;  %v4053_v40 = vpack.i.bf16 %v1540_v34, %v1539_v5  ;;  %v1718_v29 = vld [vmem:[%s5808_s9 + $0x18] sm:$0xff]  ;;  %v1717_v34 = vld [vmem:[%s5808_s9 + $0x10] sm:$0xff] }
 0x347   : > { %v1541_v41 = vmax.f32 %v1537_v38, 0.0  ;;  %v3734_v31 = vpack.c.bf16 %v1718_v29, %v1716_v28  ;;  %v1720_v38 = vld [vmem:[%s5808_s9 + $0x28] sm:$0xff]  ;;  %v1722_v47 = vld [vmem:[%s5808_s9 + $0x38] sm:$0xff]  ;;  %v3305_v28 = vld [vmem:[%s5808_s9 + $0x1c0] sm:$0xff] }
 0x348   : > { %v1542_v42 = vmax.f32 %v1538_v39, 0.0  ;;  %4054 = vrot.lane.b32.xlu0 %v4053_v40, %s4090_s19  ;;  %v3307_v29 = vld [vmem:[%s5808_s9 + $0x1d0] sm:$0xff] }
 0x34a   : > { %v4058_v43 = vpack.i.bf16 %v1542_v42, %v1541_v41 }
 0x34c   : > { %4059 = vrot.lane.b32.xlu0 %v4058_v43, %s4090_s19  ;;  %v3738_v43 = vpack.c.bf16 %v1722_v47, %v1720_v38  ;;  %v3314_v38 = vld [vmem:[%s5808_s9 + $0x208] sm:$0xf]  ;;  %v3313_v47 = vld [vmem:[%s5808_s9 + $0x200] sm:$0xf] }
 0x3ba   : > { %v4055_v44 = vpop.permute.xlu0 %4054 }
 0x3bb   : > { %v4057_v45 = vunpack.i.h.bf16 %v4055_v44  ;;  %v4056_v49 = vunpack.i.l.bf16 %v4055_v44  ;;  %v1719_v44 = vld [vmem:[%s5808_s9 + $0x20] sm:$0xff] }
 0x3bd   : > { %v1556_v52 = vsel %vm1555_vm5, %v4056_v49, %v4057_v45  ;;  %v1721_v45 = vld [vmem:[%s5808_s9 + $0x30] sm:$0xff]  ;;  %v1724_v49 = vld [vmem:[%s5808_s9 + $0x48] sm:$0xff] }
 0x3be   : > { %v4060_v51 = vpop.permute.xlu0 %4059  ;;  %v1560_v59 = vmax.f32 %v1539_v5, %v1556_v52  ;;  %v1715_v5 = vld [vmem:[%s5808_s9] sm:$0xff]  ;;  %v3740_v52 = vpack.c.bf16 %v1721_v45, %v1719_v44 }
 0x3bf   : > { %v4062_v54 = vunpack.i.h.bf16 %v4060_v51  ;;  %v4061_v55 = vunpack.i.l.bf16 %v4060_v51  ;;  %v1726_v51 = vld [vmem:[%s5808_s9 + $0x58] sm:$0xff] }
 0x3c1   : > { %v1557_v56 = vsel %vm1555_vm5, %v4061_v55, %v4062_v54  ;;  %v3742_v54 = vpack.c.bf16 %v1726_v51, %v1724_v49  ;;  %v1723_v55 = vld [vmem:[%s5808_s9 + $0x40] sm:$0xff]  ;;  %v3325_v51 = vld [vmem:[%s5811_s12 + $0x158] sm:$0xff] }
 0x3c2   : > { %v1561_v60 = vmax.f32 %v1541_v41, %v1557_v56  ;;  %v3736_v41 = vpack.c.bf16 %v1717_v34, %v1715_v5  ;;  %v1725_v56 = vld [vmem:[%s5808_s9 + $0x50] sm:$0xff]  ;;  %v3309_v5 = vld [vmem:[%s5808_s9 + $0x1e0] sm:$0xff] }
 0x3c3   : > { %v3311_v34 = vld [vmem:[%s5808_s9 + $0x1f0] sm:$0xff] }
 0x3c4   : > { %v3707_v61 = vpack.c.bf16 %v1561_v60, %v1560_v59  ;;  %v1728_v59 = vld [vmem:[%s5808_s9 + $0x68] sm:$0xff]  ;;  %v1730_v60 = vld [vmem:[%s5808_s9 + $0x78] sm:$0xff] }
 0x3c5   : > { %v3746_v62 = vpack.c.bf16 %v1730_v60, %v1728_v59  ;;  %v3329_v59 = vld [vmem:[%s5811_s12 + $0x178] sm:$0xff] }
 0x3c6   : > { %3709 = vmatpush3.bf16.msk.msra.mxu0 %vm3708_vm7, %v3707_v61 }
 0x3c7   : > { %3710 = vmatprep.subr.bf16.mxu0 %v4088_v58 }
 0x3c9   : > { %3513 = vmatmul.mubr.msk.f32.vlgmr.msra.gmra.mrb[12].mxu0 %vm1563_vm8, %v1562_v53  ;;  %v1729_v53 = vld [vmem:[%s5808_s9 + $0x70] sm:$0xff] }
 0x3ca   : > { %3713 = vmatpush3.bf16.msk.msra.mxu0 %vm3708_vm7, %v3707_v61  ;;  %3519 = vmatprep.mubr.msk.f32.mxu0 %vm4089_vm4, %v4087_v7  ;;  %v3744_v61 = vpack.c.bf16 %v1725_v56, %v1723_v55  ;;  %v3748_v3 = vpack.c.bf16 %v1729_v53, %v1727_v63  ;;  %v3324_v55 = vld [vmem:[%s5811_s12 + $0x150] sm:$0xff]  ;;  %v3327_v56 = vld [vmem:[%s5811_s12 + $0x168] sm:$0xff]  ;;  %v2043_v63 = vld [vmem:[%s5810_s11] sm:$0xff] }
 0x3cb   : > { %3715 = vmatprep.subr.bf16.mxu0 %v3714_v0  ;;  %v1732_v0 = vld [vmem:[%s5808_s9 + $0x88] sm:$0xff] }
 0x3cc   : > { %v3750_v4 = vpack.c.bf16 %v1734_v1, %v1732_v0  ;;  %v3778_v0 = vpack.c.bf16 %v3329_v59, %v3327_v56  ;;  %v3326_v1 = vld [vmem:[%s5811_s12 + $0x160] sm:$0xff]  ;;  %v2137_v56 = vld [vmem:[%s5811_s12 + $0x8] sm:$0xff]  ;;  %v2139_v59 = vld [vmem:[%s5811_s12 + $0x18] sm:$0xff] }
 0x3cd   : > { %3520 = vmatmul.mubr.msk.f32.vlgmr.msra.gmra.mrb[14].mxu0 %vm1563_vm8, %v1640_v8  ;;  %v1733_v8 = vld [vmem:[%s5808_s9 + $0x90] sm:$0xff] }
 0x3ce   : > { %3717 = vmatpush1.bf16.msra.mxu0 %v3716_v9  ;;  %1836 = vmatprep.mubr.f32.mxu0 %v4087_v7  ;;  %v3752_v9 = vpack.c.bf16 %v1733_v8, %v1731_v6  ;;  %v3333_v6 = vld [vmem:[%s5811_s12 + $0x198] sm:$0xff]  ;;  %v2044_v8 = vld [vmem:[%s5810_s11 + $0x8] sm:$0x3] }
 0x3cf   : > { %3719 = vmatprep.subr.bf16.mxu0 %v3718_v10  ;;  %v1736_v10 = vld [vmem:[%s5808_s9 + $0xa8] sm:$0xf] }
 0x3d2   : > { %3721 = vmatpush1.bf16.msra.mxu0 %v3720_v13  ;;  %v3298_v13 = vld [vmem:[%s5808_s9 + $0x188] sm:$0xff] }
 0x3d3   : > { %3723 = vmatprep.subr.bf16.mxu0 %v3722_v46  ;;  %v3300_v46 = vld [vmem:[%s5808_s9 + $0x198] sm:$0xff] }
 0x3d4   : > { %v3758_v15 = vpack.c.bf16 %v3300_v46, %v3298_v13  ;;  %v3784_v13 = vpack.c.bf16 %v3332_v36, %v3330_v11  ;;  %v3786_v46 = vpack.c.bf16 %v3337_v12, %v3335_v37 }
 0x3d6   : > { %3725 = vmatpush1.bf16.msra.mxu0 %v3724_v16  ;;  %v3297_v16 = vld [vmem:[%s5808_s9 + $0x180] sm:$0xff] }
 0x3d7   : > { %3727 = vmatprep.subr.bf16.mxu0 %v3726_v17  ;;  %v3299_v17 = vld [vmem:[%s5808_s9 + $0x190] sm:$0xff] }
 0x3da   : > { %3729 = vmatpush1.bf16.msra.mxu0 %v3728_v20  ;;  %v3760_v20 = vpack.c.bf16 %v3299_v17, %v3297_v16 }
 0x3db   : > { %3731 = vmatprep.subr.bf16.mxu0 %v3730_v23  ;;  %v3303_v23 = vld [vmem:[%s5808_s9 + $0x1b0] sm:$0xff] }
 0x3de   : > { %3733 = vmatpush1.bf16.msra.mxu0 %v3732_v26  ;;  %v3764_v26 = vpack.c.bf16 %v3303_v23, %v3301_v22  ;;  %v3792_v22 = vpack.c.bf16 %v3340_v19, %v3338_v18  ;;  %v2145_v18 = vld [vmem:[%s5811_s12 + $0x48] sm:$0xff]  ;;  %v2147_v19 = vld [vmem:[%s5811_s12 + $0x58] sm:$0xff] }
 0x3df   : > { %3287 = vmatprep.subr.msk.mxu0 %vm1765_vm9, %v3286_v27  ;;  %v3766_v27 = vpack.c.bf16 %v3308_v25, %v3306_v24  ;;  %v3342_v24 = vld [vmem:[%s5811_s12 + $0x1e0] sm:$0xff]  ;;  %v3344_v25 = vld [vmem:[%s5811_s12 + $0x1f0] sm:$0xff] }
 0x3e2   : > { %3288 = vmatpush1.msk.msra.mxu0 %vm1765_vm9, %v3285_v30  ;;  %v3310_v30 = vld [vmem:[%s5808_s9 + $0x1e8] sm:$0xff] }
 0x3e3   : > { %3735 = vmatprep.subr.bf16.mxu0 %v3734_v31  ;;  %v3312_v31 = vld [vmem:[%s5808_s9 + $0x1f8] sm:$0xff] }
 0x49c   : > { %v1636_v32 = vpop.f32.mrb[12].mxu0 }
 0x49d   : > { %v3514_v33 = vpop.f32.mrb[13].mxu0 }
 0x49e   : > { %v3770_v33 = vpack.c.bf16 %v3312_v31, %v3310_v30  ;;  %v3346_v30 = vld [vmem:[%s5811_s12 + $0x200] sm:$0xff]  ;;  %v3348_v31 = vld [vmem:[%s5811_s12 + $0x210] sm:$0xff] }
 0x4a0   : > { %v1710_v35 = vpop.f32.mrb[14].mxu0 }
 0x4a1   : > { %v4953_v39 = vmax.f32 %v1636_v32, %v1710_v35  ;;  %v3521_v40 = vpop.f32.mrb[15].mxu0  ;;  %v3768_v32 = vpack.c.bf16 %v3307_v29, %v3305_v28  ;;  %v3772_v35 = vpack.c.bf16 %v3311_v34, %v3309_v5  ;;  %v3796_v28 = vpack.c.bf16 %v3344_v25, %v3342_v24  ;;  %v2149_v24 = vld [vmem:[%s5811_s12 + $0x68] sm:$0xff]  ;;  %v2151_v25 = vld [vmem:[%s5811_s12 + $0x78] sm:$0xff] }
 0x4a2   : > { %v3800_v5 = vpack.c.bf16 %v3348_v31, %v3346_v30  ;;  %v2153_v30 = vld [vmem:[%s5811_s12 + $0x88] sm:$0xff]  ;;  %v2155_v31 = vld [vmem:[%s5811_s12 + $0x98] sm:$0xff] }
 0x4a3   : > { %v1761_v42 = vrot.slane %v4953_v39, 1  ;;  %v1945_v40 = vrot.slane %v4953_v39, 2 }
 0x4a5   : > { %3289 = vmatmul.mubr.msk.f32.vlgmr.msra.gmra.mrb[16].mxu0 %vm1762_vm10, %v1761_v42 }
 0x4a6   : > { %3737 = vmatpush1.bf16.msra.mxu0 %v3736_v41  ;;  %1915 = vmatprep.mubr.f32.mxu0 %v4087_v7  ;;  %v2027_v41 = vld [vmem:[%s5809_s10] sm:$0x3] }
 0x4a7   : > { %3739 = vmatprep.subr.bf16.mxu0 %v3738_v43  ;;  %v2032_v42 = vrot.slane %v2027_v41, %v4572_v48  ;;  %v2036_v43 = vrot.slane %v2027_v41, %v4577_v50 }
 0x4aa   : > { %3741 = vmatpush1.bf16.msra.mxu0 %v3740_v52 }
 0x4ab   : > { %3743 = vmatprep.subr.bf16.mxu0 %v3742_v54  ;;  %v3322_v54 = vld [vmem:[%s5811_s12 + $0x140] sm:$0xff] }
 0x4ac   : > { %v3776_v53 = vpack.c.bf16 %v3324_v55, %v3322_v54  ;;  %v3360_v54 = vld [vmem:[%s5811_s12 + $0x270] sm:$0xff] }
 0x4ae   : > { %3745 = vmatpush1.bf16.msra.mxu0 %v3744_v61 }
 0x4af   : > { %3747 = vmatprep.subr.bf16.mxu0 %v3746_v62 }
 0x4b2   : > { %3749 = vmatpush1.bf16.msra.mxu0 %v3748_v3  ;;  %v3328_v3 = vld [vmem:[%s5811_s12 + $0x170] sm:$0xff] }
 0x4b3   : > { %3751 = vmatprep.subr.bf16.mxu0 %v3750_v4  ;;  %v3331_v4 = vld [vmem:[%s5811_s12 + $0x188] sm:$0xff] }
 0x4b6   : > { %3753 = vmatpush1.bf16.msra.mxu0 %v3752_v9  ;;  %v3780_v9 = vpack.c.bf16 %v3328_v3, %v3326_v1  ;;  %v2141_v1 = vld [vmem:[%s5811_s12 + $0x28] sm:$0xff] }
 0x4b7   : > { %3290 = vmatprep.subr.msk.mxu0 %vm1765_vm9, %v1736_v10  ;;  %v3782_v10 = vpack.c.bf16 %v3333_v6, %v3331_v4 }
 0x4ba   : > { %3291 = vmatpush1.msk.msra.mxu0 %vm1765_vm9, %v1735_v57  ;;  %v3334_v57 = vld [vmem:[%s5811_s12 + $0x1a0] sm:$0xff] }
 0x4bb   : > { %3292 = vmatmul.mubr.msk.f32.vlgmr.msra.gmra.mrb[16].mxu0 %vm1762_vm10, %v4953_v39  ;;  %3755 = vmatprep.subr.bf16.mxu0 %v3754_v14  ;;  %v3323_v39 = vld [vmem:[%s5811_s12 + $0x148] sm:$0xff]  ;;  %v3336_v14 = vld [vmem:[%s5811_s12 + $0x1b0] sm:$0xff] }
 0x4bc   : > { %3757 = vmatpush1.bf16.msra.mxu0 %v3756_v2  ;;  %2018 = vmatprep.mubr.f32.mxu0 %v4087_v7  ;;  %v3774_v61 = vpack.c.bf16 %v3325_v51, %v3323_v39  ;;  %v3339_v2 = vld [vmem:[%s5811_s12 + $0x1c8] sm:$0xff]  ;;  %v3788_v16 = vpack.c.bf16 %v3336_v14, %v3334_v57  ;;  %v3361_v39 = vld [vmem:[%s5811_s12 + $0x278] sm:$0xff] }
 0x4bd   : > { %3759 = vmatprep.subr.bf16.mxu0 %v3758_v15  ;;  %v3341_v15 = vld [vmem:[%s5811_s12 + $0x1d8] sm:$0xff] }
 0x4be   : > { %v3790_v17 = vpack.c.bf16 %v3341_v15, %v3339_v2  ;;  %v2140_v15 = vld [vmem:[%s5811_s12 + $0x20] sm:$0xff] }
 0x4c0   : > { %3761 = vmatpush1.bf16.msra.mxu0 %v3760_v20  ;;  %v3343_v20 = vld [vmem:[%s5811_s12 + $0x1e8] sm:$0xff] }
 0x4c1   : > { %3763 = vmatprep.subr.bf16.mxu0 %v3762_v21  ;;  %v3345_v21 = vld [vmem:[%s5811_s12 + $0x1f8] sm:$0xff] }
 0x4c2   : > { %v3794_v23 = vpack.c.bf16 %v3345_v21, %v3343_v20  ;;  %v3822_v21 = vpack.c.bf16 %v2147_v19, %v2145_v18  ;;  %v3368_v19 = vld [vmem:[%s5811_s12 + $0x2a0] sm:$0xff] }
 0x4c4   : > { %3765 = vmatpush1.bf16.msra.mxu0 %v3764_v26  ;;  %v3347_v26 = vld [vmem:[%s5811_s12 + $0x208] sm:$0xff] }
 0x4c5   : > { %3767 = vmatprep.subr.bf16.mxu0 %v3766_v27  ;;  %v3349_v27 = vld [vmem:[%s5811_s12 + $0x218] sm:$0xff] }
 0x4c6   : > { %v3798_v29 = vpack.c.bf16 %v3349_v27, %v3347_v26  ;;  %v3826_v27 = vpack.c.bf16 %v2151_v25, %v2149_v24  ;;  %v3372_v25 = vld [vmem:[%s5811_s12 + $0x2c0] sm:$0xff] }
 0x4c8   : > { %3769 = vmatpush1.bf16.msra.mxu0 %v3768_v32  ;;  %v3351_v32 = vld [vmem:[%s5811_s12 + $0x228] sm:$0xff] }
 0x4c9   : > { %3771 = vmatprep.subr.bf16.mxu0 %v3770_v33  ;;  %v3353_v33 = vld [vmem:[%s5811_s12 + $0x238] sm:$0xff] }
 0x4ca   : > { %v3802_v34 = vpack.c.bf16 %v3353_v33, %v3351_v32  ;;  %v3830_v33 = vpack.c.bf16 %v2155_v31, %v2153_v30  ;;  %v3378_v30 = vld [vmem:[%s5811_s12 + $0x2f0] sm:$0xff]  ;;  %v3381_v31 = vld [vmem:[%s5811_s12 + $0x308] sm:$0xff] }
 0x4cc   : > { %3773 = vmatpush1.bf16.msra.mxu0 %v3772_v35  ;;  %v3350_v35 = vld [vmem:[%s5811_s12 + $0x220] sm:$0xff] }
 0x4cd   : > { %3315 = vmatprep.subr.msk.mxu0 %vm1765_vm9, %v3314_v38  ;;  %v3352_v38 = vld [vmem:[%s5811_s12 + $0x230] sm:$0xff] }
 0x4ce   : > { %v3804_v41 = vpack.c.bf16 %v3352_v38, %v3350_v35  ;;  %v2157_v35 = vld [vmem:[%s5811_s12 + $0xa8] sm:$0xff]  ;;  %v2159_v38 = vld [vmem:[%s5811_s12 + $0xb8] sm:$0xff] }
 0x4d0   : > { %3316 = vmatpush1.msk.msra.mxu0 %vm1765_vm9, %v3313_v47  ;;  %v3355_v47 = vld [vmem:[%s5811_s12 + $0x248] sm:$0xff] }
 0x4d1   : > { %3317 = vmatmul.mubr.msk.f32.vlgmr.msra.gmra.mrb[16].mxu0 %vm1762_vm10, %v1945_v40  ;;  %v3357_v40 = vld [vmem:[%s5811_s12 + $0x258] sm:$0xff] }
 0x4d2   : > { %2586 = vmatprep.mubr.f32.mxu0 %v4087_v7 }
 0x5a4   : > { %v2020_v44 = vpop.f32.mrb[16].mxu0 }
 0x5a5   : > { %v2039_v45 = vadd.f32 %v2032_v42, %v2020_v44  ;;  %v2022_v49 = vpop.f32.mrb[17].mxu0  ;;  %v3806_v42 = vpack.c.bf16 %v3357_v40, %v3355_v47  ;;  %v3356_v44 = vld [vmem:[%s5811_s12 + $0x250] sm:$0xff]  ;;  %v3834_v40 = vpack.c.bf16 %v2159_v38, %v2157_v35  ;;  %v3385_v38 = vld [vmem:[%s5811_s12 + $0x328] sm:$0xff] }
 0x5a6   : > { %v2040_v52 = vadd.f32 %v2036_v43, %v2022_v49  ;;  %v3354_v43 = vld [vmem:[%s5811_s12 + $0x240] sm:$0xff]  ;;  %v3359_v49 = vld [vmem:[%s5811_s12 + $0x268] sm:$0xff]  ;;  %v3382_v35 = vld [vmem:[%s5811_s12 + $0x310] sm:$0xff] }
 0x5a7   : > { %v2041_v62 = vmax.f32 %v2039_v45, 0.0  ;;  %v3808_v45 = vpack.c.bf16 %v3356_v44, %v3354_v43  ;;  %v3810_v51 = vpack.c.bf16 %v3361_v39, %v3359_v49  ;;  %v2161_v43 = vld [vmem:[%s5811_s12 + $0xc8] sm:$0xff]  ;;  %v2163_v44 = vld [vmem:[%s5811_s12 + $0xd8] sm:$0xff]  ;;  %v2160_v39 = vld [vmem:[%s5811_s12 + $0xc0] sm:$0xff] }
 0x5a8   : > { %v2042_v60 = vmax.f32 %v2040_v52, 0.0  ;;  %v3358_v52 = vld [vmem:[%s5811_s12 + $0x260] sm:$0xff]  ;;  %v3838_v49 = vpack.c.bf16 %v2163_v44, %v2161_v43  ;;  %v3386_v43 = vld [vmem:[%s5811_s12 + $0x330] sm:$0xff]  ;;  %v3389_v44 = vld [vmem:[%s5811_s12 + $0x348] sm:$0xff] }
 0x5a9   : > { %v3812_v55 = vpack.c.bf16 %v3360_v54, %v3358_v52  ;;  %v2165_v52 = vld [vmem:[%s5811_s12 + $0xe8] sm:$0xff]  ;;  %v2167_v54 = vld [vmem:[%s5811_s12 + $0xf8] sm:$0xff] }
 0x5aa   : > { %3318 = vmatprep.subr.msk.mxu1 %vm2052_vm11, %v2042_v60  ;;  %v3814_v60 = vpack.c.bf16 %v2139_v59, %v2137_v56  ;;  %v3842_v56 = vpack.c.bf16 %v2167_v54, %v2165_v52  ;;  %v2164_v59 = vld [vmem:[%s5811_s12 + $0xe0] sm:$0xff]  ;;  %v3390_v52 = vld [vmem:[%s5811_s12 + $0x350] sm:$0xff]  ;;  %v3393_v54 = vld [vmem:[%s5811_s12 + $0x368] sm:$0xff] }
 0x5ab   : > { %3319 = vmatpush1.msk.msra.mxu1 %vm2052_vm11, %v2041_v62 }
 0x5ac   : > { %3320 = vmatmul.mubr.msk.f32.vlgmr.msra.gmra.mrb[4].mxu1 %vm2045_vm12, %v2043_v63  ;;  %3775 = vmatprep.subr.bf16.mxu1 %v3774_v61 }
 0x5ad   : > { %2129 = vmatprep.mubr.f32.mxu1 %v4087_v7  ;;  %3777 = vmatpush1.bf16.msra.mxu1 %v3776_v53  ;;  %v2136_v53 = vld [vmem:[%s5811_s12] sm:$0xff] }
 0x5ae   : > { %3779 = vmatprep.subr.bf16.mxu1 %v3778_v0  ;;  %v2138_v0 = vld [vmem:[%s5811_s12 + $0x10] sm:$0xff] }
 0x5b0   : > { %3321 = vmatmul.mubr.msk.f32.gmra.mrb[6].mxu1 %vm2045_vm12, %v2044_v8 }
 0x5b1   : > { %3781 = vmatpush1.bf16.msra.mxu1 %v3780_v9 }
 0x5b2   : > { %3783 = vmatprep.subr.bf16.mxu1 %v3782_v10  ;;  %v2143_v10 = vld [vmem:[%s5811_s12 + $0x38] sm:$0xff] }
 0x5b3   : > { %v3818_v2 = vpack.c.bf16 %v2143_v10, %v2141_v1  ;;  %v2168_v1 = vld [vmem:[%s5811_s12 + $0x100] sm:$0xff] }
 0x5b4   : > { %v2172_v10 = vld [vmem:[%s5811_s12 + $0x120] sm:$0xff] }
 0x5b5   : > { %3785 = vmatpush1.bf16.msra.mxu1 %v3784_v13 }
 0x5b6   : > { %3787 = vmatprep.subr.bf16.mxu1 %v3786_v46  ;;  %v3816_v46 = vpack.c.bf16 %v2138_v0, %v2136_v53 }
 0x5b9   : > { %3789 = vmatpush1.bf16.msra.mxu1 %v3788_v16  ;;  %v2142_v16 = vld [vmem:[%s5811_s12 + $0x30] sm:$0xff] }
 0x5ba   : > { %3791 = vmatprep.subr.bf16.mxu1 %v3790_v17  ;;  %v3820_v20 = vpack.c.bf16 %v2142_v16, %v2140_v15  ;;  %v3371_v15 = vld [vmem:[%s5811_s12 + $0x2b8] sm:$0xff] }
 0x5bd   : > { %3793 = vmatpush1.bf16.msra.mxu1 %v3792_v22  ;;  %v2144_v22 = vld [vmem:[%s5811_s12 + $0x40] sm:$0xff] }
 0x5be   : > { %3795 = vmatprep.subr.bf16.mxu1 %v3794_v23  ;;  %v2146_v23 = vld [vmem:[%s5811_s12 + $0x50] sm:$0xff] }
 0x5bf   : > { %v3824_v26 = vpack.c.bf16 %v2146_v23, %v2144_v22  ;;  %v3375_v22 = vld [vmem:[%s5811_s12 + $0x2d8] sm:$0xff] }
 0x5c1   : > { %3797 = vmatpush1.bf16.msra.mxu1 %v3796_v28  ;;  %v2148_v28 = vld [vmem:[%s5811_s12 + $0x60] sm:$0xff] }
 0x5c2   : > { %3799 = vmatprep.subr.bf16.mxu1 %v3798_v29  ;;  %v2150_v29 = vld [vmem:[%s5811_s12 + $0x70] sm:$0xff] }
 0x5c3   : > { %v3828_v32 = vpack.c.bf16 %v2150_v29, %v2148_v28  ;;  %v3376_v29 = vld [vmem:[%s5811_s12 + $0x2e0] sm:$0xff] }
 0x5c5   : > { %3801 = vmatpush1.bf16.msra.mxu1 %v3800_v5  ;;  %v2152_v5 = vld [vmem:[%s5811_s12 + $0x80] sm:$0xff] }
 0x5c6   : > { %3803 = vmatprep.subr.bf16.mxu1 %v3802_v34  ;;  %v2154_v34 = vld [vmem:[%s5811_s12 + $0x90] sm:$0xff] }
 0x5c7   : > { %v3832_v47 = vpack.c.bf16 %v2154_v34, %v2152_v5  ;;  %v3380_v34 = vld [vmem:[%s5811_s12 + $0x300] sm:$0xff] }
 0x5c9   : > { %3805 = vmatpush1.bf16.msra.mxu1 %v3804_v41  ;;  %v2156_v41 = vld [vmem:[%s5811_s12 + $0xa0] sm:$0xff] }
 0x5ca   : > { %3807 = vmatprep.subr.bf16.mxu1 %v3806_v42  ;;  %v2158_v42 = vld [vmem:[%s5811_s12 + $0xb0] sm:$0xff] }
 0x5cd   : > { %3809 = vmatpush1.bf16.msra.mxu1 %v3808_v45  ;;  %v3836_v45 = vpack.c.bf16 %v2158_v42, %v2156_v41  ;;  %v3384_v42 = vld [vmem:[%s5811_s12 + $0x320] sm:$0xff] }
 0x5ce   : > { %3811 = vmatprep.subr.bf16.mxu1 %v3810_v51  ;;  %v2162_v51 = vld [vmem:[%s5811_s12 + $0xd0] sm:$0xff] }
 0x5d1   : > { %3813 = vmatpush1.bf16.msra.mxu1 %v3812_v55  ;;  %v3840_v55 = vpack.c.bf16 %v2162_v51, %v2160_v39  ;;  %v3388_v51 = vld [vmem:[%s5811_s12 + $0x340] sm:$0xff] }
 0x5d2   : > { %3815 = vmatprep.subr.bf16.mxu1 %v3814_v60  ;;  %v2166_v60 = vld [vmem:[%s5811_s12 + $0xf0] sm:$0xff] }
 0x5d3   : > { %v3844_v53 = vpack.c.bf16 %v2166_v60, %v2164_v59  ;;  %v3392_v60 = vld [vmem:[%s5811_s12 + $0x360] sm:$0xff] }
 0x67f   : > { %v5222_v61 = vpop.f32.mrb[4].mxu1 }
 0x680   : > { %v2127_v62 = vpop.f32.mrb[5].mxu1  ;;  %v2221_v3 = vrot.slane %v5222_v61, 1  ;;  %v2415_v4 = vrot.slane %v5222_v61, 2 }
 0x681   : > { %v2224_v11 = vrot.slane %v2127_v62, 1  ;;  %v2418_v36 = vrot.slane %v2127_v62, 2 }
 0x683   : > { %v2131_v63 = vpop.f32.mrb[6].mxu1 }
 0x684   : > { %v2222_v6 = vrot.slane %v2131_v63, 1  ;;  %v2416_v8 = vrot.slane %v2131_v63, 2  ;;  %v2133_v9 = vpop.f32.mrb[7].mxu1  ;;  %v2171_v63 = vld [vmem:[%s5811_s12 + $0x118] sm:$0xff] }
 0x685   : > { %v2225_v37 = vrot.slane %v2133_v9, 1  ;;  %v2419_v12 = vrot.slane %v2133_v9, 2 }
 0x686   : > { %v2223_v13 = vsel %vm612_vm1, %v2221_v3, %v2222_v6  ;;  %v5240_v57 = vsel %vm631_vm0, %v2415_v4, %v2416_v8  ;;  %v2170_v3 = vld [vmem:[%s5811_s12 + $0x110] sm:$0xff]  ;;  %v2173_v4 = vld [vmem:[%s5811_s12 + $0x128] sm:$0xff]  ;;  %v2175_v6 = vld [vmem:[%s5811_s12 + $0x138] sm:$0xff] }
 0x687   : > { %v2226_v14 = vsel %vm612_vm1, %v2224_v11, %v2225_v37  ;;  %v5250_v17 = vsel %vm631_vm0, %v2418_v36, %v2419_v12  ;;  %v3848_v8 = vpack.c.bf16 %v2170_v3, %v2168_v1  ;;  %v3850_v9 = vpack.c.bf16 %v2175_v6, %v2173_v4  ;;  %v2174_v11 = vld [vmem:[%s5811_s12 + $0x130] sm:$0xff]  ;;  %v3365_v36 = vld [vmem:[%s5811_s12 + $0x288] sm:$0xff]  ;;  %v3367_v37 = vld [vmem:[%s5811_s12 + $0x298] sm:$0xff] }
 0x688   : > { %3362 = vmatprep.mubr.msk.f32.mxu1 %vm1011_vm3, %v2226_v14  ;;  %v3852_v12 = vpack.c.bf16 %v2174_v11, %v2172_v10  ;;  %v3366_v14 = vld [vmem:[%s5811_s12 + $0x290] sm:$0xff]  ;;  %v3396_v3 = vld [vmem:[%s5811_s12 + $0x380] sm:$0xff]  ;;  %v3401_v6 = vld [vmem:[%s5811_s12 + $0x3a8] sm:$0xff] }
 0x689   : > { %2295 = vmatmul.mubr.f32.vlgmr.msra.gmra.mrb[8].mxu1 %v2223_v13  ;;  %v3854_v13 = vpack.c.bf16 %v3367_v37, %v3365_v36  ;;  %v3398_v4 = vld [vmem:[%s5811_s12 + $0x390] sm:$0xff]  ;;  %v3400_v11 = vld [vmem:[%s5811_s12 + $0x3a0] sm:$0xff] }
 0x68a   : > { %3817 = vmatpush1.bf16.msra.mxu1 %v3816_v46  ;;  %3363 = vmatprep.mubr.msk.f32.mxu1 %vm1011_vm3, %v2127_v62  ;;  %v2169_v62 = vld [vmem:[%s5811_s12 + $0x108] sm:$0xff]  ;;  %v3364_v46 = vld [vmem:[%s5811_s12 + $0x280] sm:$0xff]  ;;  %v3402_v36 = vld [vmem:[%s5811_s12 + $0x3b0] sm:$0xff] }
 0x68b   : > { %3819 = vmatprep.subr.bf16.mxu1 %v3818_v2  ;;  %v3846_v0 = vpack.c.bf16 %v2171_v63, %v2169_v62  ;;  %v3369_v2 = vld [vmem:[%s5811_s12 + $0x2a8] sm:$0xff]  ;;  %v3856_v16 = vpack.c.bf16 %v3366_v14, %v3364_v46  ;;  %v3394_v62 = vld [vmem:[%s5811_s12 + $0x370] sm:$0xff]  ;;  %v3892_v37 = vpack.c.bf16 %v3402_v36, %v3400_v11 }
 0x68c   : > { %v3858_v18 = vpack.c.bf16 %v3371_v15, %v3369_v2  ;;  %v3397_v63 = vld [vmem:[%s5811_s12 + $0x388] sm:$0xff]  ;;  %v3437_v14 = vld [vmem:[%s5814_s15 + $0x190] sm:$0xff]  ;;  %v3438_v2 = vld [vmem:[%s5814_s15 + $0x198] sm:$0xff] }
 0x68d   : > { %v3970_v15 = vpack.c.bf16 %v3438_v2, %v3437_v14  ;;  %v3420_v11 = vld [vmem:[%s5814_s15 + $0x128] sm:$0xff] }
 0x68e   : > { %3821 = vmatpush1.bf16.msra.mxu1 %v3820_v20  ;;  %v3370_v20 = vld [vmem:[%s5811_s12 + $0x2b0] sm:$0xff]  ;;  %v3424_v14 = vld [vmem:[%s5814_s15 + $0x148] sm:$0xff] }
 0x68f   : > { %3823 = vmatprep.subr.bf16.mxu1 %v3822_v21  ;;  %v3373_v21 = vld [vmem:[%s5811_s12 + $0x2c8] sm:$0xff]  ;;  %v3860_v23 = vpack.c.bf16 %v3370_v20, %v3368_v19  ;;  %v3441_v19 = vld [vmem:[%s5814_s15 + $0x1b0] sm:$0xff]  ;;  %v3442_v20 = vld [vmem:[%s5814_s15 + $0x1b8] sm:$0xff] }
 0x690   : > { %v3862_v24 = vpack.c.bf16 %v3375_v22, %v3373_v21  ;;  %v3976_v21 = vpack.c.bf16 %v3442_v20, %v3441_v19  ;;  %v3443_v22 = vld [vmem:[%s5814_s15 + $0x1c0] sm:$0xff]  ;;  %v3428_v19 = vld [vmem:[%s5814_s15 + $0x168] sm:$0xff] }
 0x692   : > { %3825 = vmatpush1.bf16.msra.mxu1 %v3824_v26  ;;  %v3374_v26 = vld [vmem:[%s5811_s12 + $0x2d0] sm:$0xff] }
 0x693   : > { %3827 = vmatprep.subr.bf16.mxu1 %v3826_v27  ;;  %v3377_v27 = vld [vmem:[%s5811_s12 + $0x2e8] sm:$0xff] }
 0x696   : > { %3829 = vmatpush1.bf16.msra.mxu1 %v3828_v32  ;;  %v3383_v32 = vld [vmem:[%s5811_s12 + $0x318] sm:$0xff] }
 0x697   : > { %3831 = vmatprep.subr.bf16.mxu1 %v3830_v33  ;;  %v3868_v33 = vpack.c.bf16 %v3378_v30, %v3376_v29  ;;  %v3870_v5 = vpack.c.bf16 %v3383_v32, %v3381_v31  ;;  %v3449_v29 = vld [vmem:[%s5814_s15 + $0x1f0] sm:$0xff]  ;;  %v3450_v30 = vld [vmem:[%s5814_s15 + $0x1f8] sm:$0xff]  ;;  %v3451_v32 = vld [vmem:[%s5814_s15 + $0x200] sm:$0xff] }
 0x698   : > { %v3988_v31 = vpack.c.bf16 %v3450_v30, %v3449_v29 }
 0x69a   : > { %3833 = vmatpush1.bf16.msra.mxu1 %v3832_v47  ;;  %v3387_v47 = vld [vmem:[%s5811_s12 + $0x338] sm:$0xff] }
 0x69b   : > { %3835 = vmatprep.subr.bf16.mxu1 %v3834_v40  ;;  %v3872_v40 = vpack.c.bf16 %v3382_v35, %v3380_v34  ;;  %v3874_v41 = vpack.c.bf16 %v3387_v47, %v3385_v38  ;;  %v3453_v34 = vld [vmem:[%s5814_s15 + $0x210] sm:$0xff]  ;;  %v3454_v35 = vld [vmem:[%s5814_s15 + $0x218] sm:$0xff]  ;;  %v2497_v47 = vld [vmem:[%s5812_s13] sm:$0x3] }
 0x69c   : > { %v3994_v38 = vpack.c.bf16 %v3454_v35, %v3453_v34 }
 0x69e   : > { %3837 = vmatpush1.bf16.msra.mxu1 %v3836_v45  ;;  %v3391_v45 = vld [vmem:[%s5811_s12 + $0x358] sm:$0xff] }
 0x69f   : > { %3839 = vmatprep.subr.bf16.mxu1 %v3838_v49  ;;  %v3876_v49 = vpack.c.bf16 %v3386_v43, %v3384_v42  ;;  %v3878_v39 = vpack.c.bf16 %v3391_v45, %v3389_v44 }
 0x6a2   : > { %3841 = vmatpush1.bf16.msra.mxu1 %v3840_v55  ;;  %v3395_v55 = vld [vmem:[%s5811_s12 + $0x378] sm:$0xff] }
 0x6a3   : > { %3843 = vmatprep.subr.bf16.mxu1 %v3842_v56  ;;  %v3880_v56 = vpack.c.bf16 %v3390_v52, %v3388_v51  ;;  %v3882_v59 = vpack.c.bf16 %v3395_v55, %v3393_v54  ;;  %v3409_v54 = vld [vmem:[%s5814_s15 + $0xd0] sm:$0xff]  ;;  %v3410_v55 = vld [vmem:[%s5814_s15 + $0xd8] sm:$0xff] }
 0x6a6   : > { %3845 = vmatpush1.bf16.msra.mxu1 %v3844_v53  ;;  %v3399_v53 = vld [vmem:[%s5811_s12 + $0x398] sm:$0xff] }
 0x6a7   : > { %3847 = vmatprep.subr.bf16.mxu1 %v3846_v0  ;;  %v3884_v0 = vpack.c.bf16 %v3394_v62, %v3392_v60  ;;  %v3886_v1 = vpack.c.bf16 %v3399_v53, %v3397_v63  ;;  %v3411_v60 = vld [vmem:[%s5814_s15 + $0xe0] sm:$0xff]  ;;  %v3412_v62 = vld [vmem:[%s5814_s15 + $0xe8] sm:$0xff]  ;;  %v3414_v53 = vld [vmem:[%s5814_s15 + $0xf8] sm:$0xff] }
 0x6a8   : > { %v3901_v63 = vpack.c.bf16 %v3412_v62, %v3411_v60  ;;  %v2607_v62 = vld [vmem:[%s5814_s15 + $0x40] sm:$0xff] }
 0x6aa   : > { %3849 = vmatpush1.bf16.msra.mxu1 %v3848_v8  ;;  %v3403_v8 = vld [vmem:[%s5811_s12 + $0x3b8] sm:$0xff] }
 0x6ab   : > { %3851 = vmatprep.subr.bf16.mxu1 %v3850_v9  ;;  %v3888_v9 = vpack.c.bf16 %v3398_v4, %v3396_v3  ;;  %v3890_v10 = vpack.c.bf16 %v3403_v8, %v3401_v6  ;;  %v3416_v3 = vld [vmem:[%s5814_s15 + $0x108] sm:$0xff]  ;;  %v3417_v6 = vld [vmem:[%s5814_s15 + $0x110] sm:$0xff]  ;;  %v3418_v8 = vld [vmem:[%s5814_s15 + $0x118] sm:$0xff] }
 0x6ae   : > { %3853 = vmatpush1.bf16.msra.mxu1 %v3852_v12  ;;  %v3435_v12 = vld [vmem:[%s5814_s15 + $0x180] sm:$0xff] }
 0x6af   : > { %3855 = vmatprep.subr.bf16.mxu1 %v3854_v13  ;;  %v3436_v13 = vld [vmem:[%s5814_s15 + $0x188] sm:$0xff] }
 0x6b0   : > { %v3967_v46 = vpack.c.bf16 %v3436_v13, %v3435_v12  ;;  %v3422_v12 = vld [vmem:[%s5814_s15 + $0x138] sm:$0xff] }
 0x6b1   : > { %2368 = vmatmul.mubr.f32.vlgmr.msra.gmra.mrb[8].mxu1 %v5222_v61  ;;  %v3379_v61 = vld [vmem:[%s5811_s12 + $0x2f8] sm:$0xff] }
 0x6b2   : > { %3857 = vmatpush1.bf16.msra.mxu1 %v3856_v16  ;;  %3404 = vmatprep.mubr.msk.f32.mxu1 %vm1011_vm3, %v5250_v17  ;;  %v3864_v17 = vpack.c.bf16 %v3374_v26, %v3372_v25  ;;  %v3866_v28 = vpack.c.bf16 %v3379_v61, %v3377_v27  ;;  %v3440_v16 = vld [vmem:[%s5814_s15 + $0x1a8] sm:$0xff]  ;;  %v3445_v25 = vld [vmem:[%s5814_s15 + $0x1d0] sm:$0xff]  ;;  %v3446_v26 = vld [vmem:[%s5814_s15 + $0x1d8] sm:$0xff] }
 0x6b3   : > { %3859 = vmatprep.subr.bf16.mxu1 %v3858_v18  ;;  %v3982_v27 = vpack.c.bf16 %v3446_v26, %v3445_v25  ;;  %v3447_v61 = vld [vmem:[%s5814_s15 + $0x1e0] sm:$0xff]  ;;  %v3430_v25 = vld [vmem:[%s5814_s15 + $0x178] sm:$0xff] }
 0x6b6   : > { %3861 = vmatpush1.bf16.msra.mxu1 %v3860_v23  ;;  %v3444_v23 = vld [vmem:[%s5814_s15 + $0x1c8] sm:$0xff] }
 0x6b7   : > { %3863 = vmatprep.subr.bf16.mxu1 %v3862_v24  ;;  %v3979_v24 = vpack.c.bf16 %v3444_v23, %v3443_v22  ;;  %v3456_v22 = vld [vmem:[%s5814_s15 + $0x228] sm:$0xff] }
 0x6ba   : > { %3865 = vmatpush1.bf16.msra.mxu1 %v3864_v17  ;;  %v3448_v17 = vld [vmem:[%s5814_s15 + $0x1e8] sm:$0xff] }
 0x6bb   : > { %3867 = vmatprep.subr.bf16.mxu1 %v3866_v28  ;;  %v3985_v28 = vpack.c.bf16 %v3448_v17, %v3447_v61  ;;  %v3458_v61 = vld [vmem:[%s5814_s15 + $0x238] sm:$0xff] }
 0x6be   : > { %3869 = vmatpush1.bf16.msra.mxu1 %v3868_v33  ;;  %v3452_v33 = vld [vmem:[%s5814_s15 + $0x208] sm:$0xff] }
 0x6bf   : > { %3871 = vmatprep.subr.bf16.mxu1 %v3870_v5  ;;  %v3991_v5 = vpack.c.bf16 %v3452_v33, %v3451_v32  ;;  %v2600_v32 = vld [vmem:[%s5814_s15 + $0x8] sm:$0xff] }
 0x6c2   : > { %3873 = vmatpush1.bf16.msra.mxu1 %v3872_v40  ;;  %v2502_v40 = vrot.slane %v2497_v47, %v4572_v48  ;;  %v2513_v48 = vld [vmem:[%s5813_s14] sm:$0xff] }
 0x6c3   : > { %3875 = vmatprep.subr.bf16.mxu1 %v3874_v41  ;;  %v2506_v41 = vrot.slane %v2497_v47, %v4577_v50 }
 0x6c6   : > { %3877 = vmatpush1.bf16.msra.mxu1 %v3876_v49  ;;  %v3407_v49 = vld [vmem:[%s5814_s15 + $0xc0] sm:$0xff] }
 0x6c7   : > { %3879 = vmatprep.subr.bf16.mxu1 %v3878_v39  ;;  %v3408_v39 = vld [vmem:[%s5814_s15 + $0xc8] sm:$0xff] }
 0x6c8   : > { %v3895_v50 = vpack.c.bf16 %v3408_v39, %v3407_v49 }
 0x6ca   : > { %3881 = vmatpush1.bf16.msra.mxu1 %v3880_v56  ;;  %v2514_v56 = vld [vmem:[%s5813_s14 + $0x8] sm:$0xff] }
 0x6cb   : > { %3883 = vmatprep.subr.bf16.mxu1 %v3882_v59  ;;  %v3898_v59 = vpack.c.bf16 %v3410_v55, %v3409_v54  ;;  %v2604_v54 = vld [vmem:[%s5814_s15 + $0x28] sm:$0xff] }
 0x6ce   : > { %3885 = vmatpush1.bf16.msra.mxu1 %v3884_v0 }
 0x6cf   : > { %3887 = vmatprep.subr.bf16.mxu1 %v3886_v1  ;;  %v3415_v1 = vld [vmem:[%s5814_s15 + $0x100] sm:$0xff] }
 0x6d0   : > { %v3907_v4 = vpack.c.bf16 %v3416_v3, %v3415_v1  ;;  %v2611_v3 = vld [vmem:[%s5814_s15 + $0x60] sm:$0xff] }
 0x6d2   : > { %3889 = vmatpush1.bf16.msra.mxu1 %v3888_v9  ;;  %v3910_v9 = vpack.c.bf16 %v3418_v8, %v3417_v6  ;;  %v2613_v8 = vld [vmem:[%s5814_s15 + $0x70] sm:$0xff] }
 0x6d3   : > { %3891 = vmatprep.subr.bf16.mxu1 %v3890_v10  ;;  %v3419_v10 = vld [vmem:[%s5814_s15 + $0x120] sm:$0xff] }
 0x6d4   : > { %v3913_v36 = vpack.c.bf16 %v3420_v11, %v3419_v10  ;;  %v2615_v11 = vld [vmem:[%s5814_s15 + $0x80] sm:$0xff] }
 0x6d6   : > { %3893 = vmatpush1.bf16.msra.mxu1 %v3892_v37  ;;  %v3421_v37 = vld [vmem:[%s5814_s15 + $0x130] sm:$0xff] }
 0x6d7   : > { %3966 = vmatprep.subr.bf16.mxu1 %v4088_v58  ;;  %v3916_v13 = vpack.c.bf16 %v3422_v12, %v3421_v37  ;;  %v2617_v12 = vld [vmem:[%s5814_s15 + $0x90] sm:$0xff] }
 0x6d9   : > { %2489 = vmatmul.mubr.f32.vlgmr.msra.gmra.mrb[8].mxu1 %v5240_v57  ;;  %v3439_v57 = vld [vmem:[%s5814_s15 + $0x1a0] sm:$0xff] }
 0x6da   : > { %3968 = vmatpush1.bf16.msra.mxu1 %v3967_v46  ;;  %v3973_v18 = vpack.c.bf16 %v3440_v16, %v3439_v57  ;;  %v3423_v46 = vld [vmem:[%s5814_s15 + $0x140] sm:$0xff]  ;;  %v3426_v57 = vld [vmem:[%s5814_s15 + $0x158] sm:$0xff] }
 0x6db   : > { %3969 = vmatprep.subr.bf16.mxu1 %v4088_v58  ;;  %v3919_v2 = vpack.c.bf16 %v3424_v14, %v3423_v46  ;;  %v2619_v14 = vld [vmem:[%s5814_s15 + $0xa0] sm:$0xff] }
 0x6de   : > { %3971 = vmatpush1.bf16.msra.mxu1 %v3970_v15  ;;  %v3425_v15 = vld [vmem:[%s5814_s15 + $0x150] sm:$0xff] }
 0x6df   : > { %3972 = vmatprep.subr.bf16.mxu1 %v4088_v58  ;;  %v3922_v16 = vpack.c.bf16 %v3426_v57, %v3425_v15  ;;  %v2621_v57 = vld [vmem:[%s5814_s15 + $0xb0] sm:$0xff] }
 0x6e2   : > { %3974 = vmatpush1.bf16.msra.mxu1 %v3973_v18  ;;  %v3427_v18 = vld [vmem:[%s5814_s15 + $0x160] sm:$0xff] }
 0x6e3   : > { %3975 = vmatprep.subr.bf16.mxu1 %v4088_v58  ;;  %v3925_v20 = vpack.c.bf16 %v3428_v19, %v3427_v18 }
 0x6e6   : > { %3977 = vmatpush1.bf16.msra.mxu1 %v3976_v21  ;;  %v3455_v21 = vld [vmem:[%s5814_s15 + $0x220] sm:$0xff] }
 0x6e7   : > { %3978 = vmatprep.subr.bf16.mxu1 %v4088_v58  ;;  %v3997_v23 = vpack.c.bf16 %v3456_v22, %v3455_v21 }
 0x6ea   : > { %3980 = vmatpush1.bf16.msra.mxu1 %v3979_v24  ;;  %v3429_v24 = vld [vmem:[%s5814_s15 + $0x170] sm:$0xff] }
 0x6eb   : > { %3981 = vmatprep.subr.bf16.mxu1 %v4088_v58  ;;  %v3928_v26 = vpack.c.bf16 %v3430_v25, %v3429_v24 }
 0x6ee   : > { %3983 = vmatpush1.bf16.msra.mxu1 %v3982_v27  ;;  %v3457_v27 = vld [vmem:[%s5814_s15 + $0x230] sm:$0xff] }
 0x6ef   : > { %3984 = vmatprep.subr.bf16.mxu1 %v4088_v58  ;;  %v4000_v17 = vpack.c.bf16 %v3458_v61, %v3457_v27 }
 0x6f2   : > { %3986 = vmatpush1.bf16.msra.mxu1 %v3985_v28 }
 0x6f3   : > { %3987 = vmatprep.subr.bf16.mxu1 %v4088_v58 }
 0x6f6   : > { %3989 = vmatpush1.bf16.msra.mxu1 %v3988_v31  ;;  %v2599_v31 = vld [vmem:[%s5814_s15] sm:$0xff] }
 0x6f7   : > { %3990 = vmatprep.subr.bf16.mxu1 %v4088_v58 }
 0x6fa   : > { %3992 = vmatpush1.bf16.msra.mxu1 %v3991_v5 }
 0x6fb   : > { %3993 = vmatprep.subr.bf16.mxu1 %v4088_v58 }
 0x6fe   : > { %3995 = vmatpush1.bf16.msra.mxu1 %v3994_v38 }
 0x6ff   : > { %3996 = vmatprep.subr.bf16.mxu1 %v4088_v58 }
 0x702   : > { %3998 = vmatpush1.bf16.msra.mxu1 %v3997_v23 }
 0x703   : > { %3999 = vmatprep.subr.bf16.mxu1 %v4088_v58 }
 0x706   : > { %4001 = vmatpush1.bf16.msra.mxu1 %v4000_v17 }
 0x7ac   : > { %v2490_v42 = vpop.f32.mrb[8].mxu1 }
 0x7ad   : > { %v2509_v43 = vadd.f32 %v2502_v40, %v2490_v42  ;;  %v2492_v44 = vpop.f32.mrb[9].mxu1 }
 0x7ae   : > { %v2510_v45 = vadd.f32 %v2506_v41, %v2492_v44  ;;  %v3931_v44 = vpack.c.bf16 %v2600_v32, %v2599_v31 }
 0x7af   : > { %v2511_v52 = vmax.f32 %v2509_v43, 0.0 }
 0x7b0   : > { %v2512_v51 = vmax.f32 %v2510_v45, 0.0 }
 0x7b2   : > { %2522 = vmatprep.subr.mxu0 %v2512_v51  ;;  %v2601_v51 = vld [vmem:[%s5814_s15 + $0x10] sm:$0xff] }
 0x7b3   : > { %2523 = vmatpush1.msra.mxu0 %v2511_v52  ;;  %v2602_v52 = vld [vmem:[%s5814_s15 + $0x18] sm:$0xff] }
 0x7b4   : > { %3405 = vmatmul.mubr.msk.f32.vlgmr.msra.gmra.mrb[18].mxu0 %vm2515_vm13, %v2513_v48  ;;  %3894 = vmatprep.subr.bf16.mxu0 %v4088_v58  ;;  %v3934_v48 = vpack.c.bf16 %v2602_v52, %v2601_v51 }
 0x7b5   : > { %2592 = vmatprep.mubr.f32.mxu0 %v4087_v7  ;;  %3896 = vmatpush1.bf16.msra.mxu0 %v3895_v50  ;;  %v3413_v7 = vld [vmem:[%s5814_s15 + $0xf0] sm:$0xff]  ;;  %v2603_v50 = vld [vmem:[%s5814_s15 + $0x20] sm:$0xff] }
 0x7b6   : > { %3897 = vmatprep.subr.bf16.mxu0 %v4088_v58  ;;  %v3904_v0 = vpack.c.bf16 %v3414_v53, %v3413_v7  ;;  %v3937_v55 = vpack.c.bf16 %v2604_v54, %v2603_v50  ;;  %v2609_v53 = vld [vmem:[%s5814_s15 + $0x50] sm:$0xff] }
 0x7b8   : > { %3406 = vmatmul.mubr.msk.f32.gmra.mrb[20].mxu0 %vm2515_vm13, %v2514_v56  ;;  %v2605_v56 = vld [vmem:[%s5814_s15 + $0x30] sm:$0xff] }
 0x7b9   : > { %3899 = vmatpush1.bf16.msra.mxu0 %v3898_v59  ;;  %v2606_v59 = vld [vmem:[%s5814_s15 + $0x38] sm:$0xff] }
 0x7ba   : > { %3900 = vmatprep.subr.bf16.mxu0 %v4088_v58  ;;  %v3940_v60 = vpack.c.bf16 %v2606_v59, %v2605_v56 }
 0x7bd   : > { %3902 = vmatpush1.bf16.msra.mxu0 %v3901_v63  ;;  %v2608_v63 = vld [vmem:[%s5814_s15 + $0x48] sm:$0xff] }
 0x7be   : > { %3903 = vmatprep.subr.bf16.mxu0 %v4088_v58  ;;  %v3943_v7 = vpack.c.bf16 %v2608_v63, %v2607_v62 }
 0x7c1   : > { %3905 = vmatpush1.bf16.msra.mxu0 %v3904_v0  ;;  %v2610_v0 = vld [vmem:[%s5814_s15 + $0x58] sm:$0xff] }
 0x7c2   : > { %3906 = vmatprep.subr.bf16.mxu0 %v4088_v58  ;;  %v3946_v1 = vpack.c.bf16 %v2610_v0, %v2609_v53 }
 0x7c5   : > { %3908 = vmatpush1.bf16.msra.mxu0 %v3907_v4  ;;  %v2612_v4 = vld [vmem:[%s5814_s15 + $0x68] sm:$0xff] }
 0x7c6   : > { %3909 = vmatprep.subr.bf16.mxu0 %v4088_v58  ;;  %v3949_v6 = vpack.c.bf16 %v2612_v4, %v2611_v3 }
 0x7c9   : > { %3911 = vmatpush1.bf16.msra.mxu0 %v3910_v9  ;;  %v2614_v9 = vld [vmem:[%s5814_s15 + $0x78] sm:$0xff] }
 0x7ca   : > { %3912 = vmatprep.subr.bf16.mxu0 %v4088_v58  ;;  %v3952_v10 = vpack.c.bf16 %v2614_v9, %v2613_v8 }
 0x7cd   : > { %3914 = vmatpush1.bf16.msra.mxu0 %v3913_v36  ;;  %v2616_v36 = vld [vmem:[%s5814_s15 + $0x88] sm:$0xff] }
 0x7ce   : > { %3915 = vmatprep.subr.bf16.mxu0 %v4088_v58  ;;  %v3955_v37 = vpack.c.bf16 %v2616_v36, %v2615_v11 }
 0x7d1   : > { %3917 = vmatpush1.bf16.msra.mxu0 %v3916_v13  ;;  %v2618_v13 = vld [vmem:[%s5814_s15 + $0x98] sm:$0xff] }
 0x7d2   : > { %3918 = vmatprep.subr.bf16.mxu0 %v4088_v58  ;;  %v3958_v46 = vpack.c.bf16 %v2618_v13, %v2617_v12 }
 0x7d5   : > { %3920 = vmatpush1.bf16.msra.mxu0 %v3919_v2  ;;  %v2620_v2 = vld [vmem:[%s5814_s15 + $0xa8] sm:$0xff] }
 0x7d6   : > { %3921 = vmatprep.subr.bf16.mxu0 %v4088_v58  ;;  %v3961_v15 = vpack.c.bf16 %v2620_v2, %v2619_v14 }
 0x7d9   : > { %3923 = vmatpush1.bf16.msra.mxu0 %v3922_v16  ;;  %v2622_v16 = vld [vmem:[%s5814_s15 + $0xb8] sm:$0xff] }
 0x7da   : > { %3924 = vmatprep.subr.bf16.mxu0 %v4088_v58  ;;  %v3964_v18 = vpack.c.bf16 %v2622_v16, %v2621_v57 }
 0x7dd   : > { %3926 = vmatpush1.bf16.msra.mxu0 %v3925_v20 }
 0x7de   : > { %3927 = vmatprep.subr.bf16.mxu0 %v4088_v58 }
 0x7e1   : > { %3929 = vmatpush1.bf16.msra.mxu0 %v3928_v26 }
 0x7e2   : > { %3930 = vmatprep.subr.bf16.mxu0 %v4088_v58 }
 0x887   : > { %v5655_v28 = vpop.f32.mrb[18].mxu0 }
 0x888   : > { %v2590_v29 = vpop.f32.mrb[19].mxu0  ;;  %v2652_v33 = vrot.slane %v5655_v28, 1  ;;  %v2844_v5 = vrot.slane %v5655_v28, 2 }
 0x889   : > { %v2655_v47 = vrot.slane %v2590_v29, 1  ;;  %v2847_v40 = vrot.slane %v2590_v29, 2 }
 0x88b   : > { %v5657_v30 = vpop.f32.mrb[20].mxu0 }
 0x88c   : > { %v2653_v34 = vrot.slane %v5657_v30, 1  ;;  %v2845_v35 = vrot.slane %v5657_v30, 2  ;;  %v5669_v38 = vpop.f32.mrb[21].mxu0 }
 0x88d   : > { %v2656_v41 = vrot.slane %v5669_v38, 1  ;;  %v2848_v42 = vrot.slane %v5669_v38, 2 }
 0x88e   : > { %v2654_v43 = vsel %vm612_vm1, %v2652_v33, %v2653_v34  ;;  %v2846_v45 = vsel %vm631_vm0, %v2844_v5, %v2845_v35 }
 0x88f   : > { %v2657_v49 = vsel %vm612_vm1, %v2655_v47, %v2656_v41  ;;  %v2849_v39 = vsel %vm631_vm0, %v2847_v40, %v2848_v42 }
 0x890   : > { %3431 = vmatprep.mubr.msk.f32.mxu0 %vm2660_vm14, %v2657_v49  ;;  %3459 = vmatprep.mubr.msk.f32.mxu1 %vm2660_vm14, %v2849_v39 }
 0x891   : > { %2730 = vmatmul.mubr.f32.vlgmr.msra.gmra.mrb[22].mxu0 %v2654_v43  ;;  %2921 = vmatmul.mubr.f32.vlgmr.msra.gmra.mrb[10].mxu1 %v2846_v45 }
 0x892   : > { %3932 = vmatpush1.bf16.msra.mxu0 %v3931_v44  ;;  %3432 = vmatprep.mubr.msk.f32.mxu0 %vm2660_vm14, %v2656_v41 }
 0x893   : > { %3933 = vmatprep.subr.bf16.mxu0 %v4088_v58  ;;  %3460 = vmatprep.mubr.msk.f32.mxu1 %vm2660_vm14, %v2848_v42 }
 0x895   : > { %2735 = vmatmul.mubr.f32.gmra.mrb[24].mxu0 %v2653_v34  ;;  %2926 = vmatmul.mubr.f32.gmra.mrb[12].mxu1 %v2845_v35 }
 0x896   : > { %3935 = vmatpush1.bf16.msra.mxu0 %v3934_v48  ;;  %3433 = vmatprep.mubr.msk.f32.mxu0 %vm2660_vm14, %v2590_v29 }
 0x897   : > { %3936 = vmatprep.subr.bf16.mxu0 %v4088_v58 }
 0x89a   : > { %3938 = vmatpush1.bf16.msra.mxu0 %v3937_v55 }
 0x89b   : > { %3939 = vmatprep.subr.bf16.mxu0 %v4088_v58 }
 0x89e   : > { %3941 = vmatpush1.bf16.msra.mxu0 %v3940_v60 }
 0x89f   : > { %3942 = vmatprep.subr.bf16.mxu0 %v4088_v58 }
 0x8a2   : > { %3944 = vmatpush1.bf16.msra.mxu0 %v3943_v7 }
 0x8a3   : > { %3945 = vmatprep.subr.bf16.mxu0 %v4088_v58 }
 0x8a6   : > { %3947 = vmatpush1.bf16.msra.mxu0 %v3946_v1 }
 0x8a7   : > { %3948 = vmatprep.subr.bf16.mxu0 %v4088_v58 }
 0x8aa   : > { %3950 = vmatpush1.bf16.msra.mxu0 %v3949_v6 }
 0x8ab   : > { %3951 = vmatprep.subr.bf16.mxu0 %v4088_v58 }
 0x8ae   : > { %3953 = vmatpush1.bf16.msra.mxu0 %v3952_v10 }
 0x8af   : > { %3954 = vmatprep.subr.bf16.mxu0 %v4088_v58 }
 0x8b2   : > { %3956 = vmatpush1.bf16.msra.mxu0 %v3955_v37 }
 0x8b3   : > { %3957 = vmatprep.subr.bf16.mxu0 %v4088_v58 }
 0x8b6   : > { %3959 = vmatpush1.bf16.msra.mxu0 %v3958_v46 }
 0x8b7   : > { %3960 = vmatprep.subr.bf16.mxu0 %v4088_v58 }
 0x8ba   : > { %3962 = vmatpush1.bf16.msra.mxu0 %v3961_v15 }
 0x8bb   : > { %3963 = vmatprep.subr.bf16.mxu0 %v4088_v58  ;;  %v3461_v58 = vld [vmem:[%s5815_s16] ss:$0 sm:$0xff] }
 0x8be   : > { %3965 = vmatpush1.bf16.msra.mxu0 %v3964_v18 }
 0x8c1   : > { %2809 = vmatmul.mubr.f32.vlgmr.msra.gmra.mrb[26].mxu0 %v5655_v28 }
 0x8c2   : > { %3434 = vmatprep.mubr.msk.f32.mxu0 %vm2660_vm14, %v5669_v38 }
 0x8c5   : > { %2814 = vmatmul.mubr.f32.gmra.mrb[28].mxu0 %v5657_v30 }
 0x964   : > { %v2731_v19 = vpop.f32.mrb[22].mxu0  ;;  %v2922_v20 = vpop.f32.mrb[10].mxu1 }
 0x965   : > { %v2733_v21 = vpop.f32.mrb[23].mxu0  ;;  %v2924_v22 = vpop.f32.mrb[11].mxu1 }
 0x968   : > { %v2736_v23 = vpop.f32.mrb[24].mxu0  ;;  %v2927_v24 = vpop.f32.mrb[12].mxu1 }
 0x969   : > { %v2738_v25 = vpop.f32.mrb[25].mxu0  ;;  %v2929_v26 = vpop.f32.mrb[13].mxu1 }
 0x994   : > { %v2810_v27 = vpop.f32.mrb[26].mxu0 }
 0x995   : > { %v2811_v61 = vadd.f32 %v2810_v27, %v2731_v19  ;;  %v2812_v17 = vpop.f32.mrb[27].mxu0 }
 0x997   : > { %v2931_v28 = vadd.f32 %v2922_v20, %v2811_v61 }
 0x998   : > { %v2815_v29 = vpop.f32.mrb[28].mxu0 }
 0x999   : > { %v2940_v31 = vadd.f32 %v3461_v58, %v2931_v28  ;;  %v2816_v32 = vadd.f32 %v2815_v29, %v2736_v23  ;;  %v2817_v30 = vpop.f32.mrb[29].mxu0 }
 0x99b   : > { %v2932_v33 = vadd.f32 %v2927_v24, %v2816_v32  ;;  %2952 = vrot.lane.b32.xlu0 %v2940_v31, %s4092_s20  ;;  %2944 = vrot.lane.b32.xlu1 %v2940_v31, %s4093_s21 }
 0x99d   : > { %v2941_v5 = vadd.f32 %v3461_v58, %v2932_v33 }
 0x99f   : > { %2946 = vrot.lane.b32.xlu1 %v2941_v5, %s4093_s21 }
 0x9a3   : > { %2954 = vrot.lane.b32.xlu1 %v2941_v5, %s4092_s20 }
 0xa0d   : > { %v2945_v34 = vpop.permute.xlu1 %2944  ;;  %v2953_v38 = vpop.permute.xlu0 %2952 }
 0xa0e   : > { %v2950_v35 = vmax.f32 %v2940_v31, %v2945_v34 }
 0xa10   : > { %v2958_v47 = vmax.f32 %v2950_v35, %v2953_v38 }
 0xa11   : > { %v2947_v40 = vpop.permute.xlu1 %2946 }
 0xa12   : > { %2968 = vrot.lane.b32.xlu0 %v2958_v47, %s4094_s22  ;;  %v2951_v41 = vmax.f32 %v2941_v5, %v2947_v40  ;;  %v2960_v53 = vsub.f32 %v2940_v31, %v2958_v47 }
 0xa14   : > { %v2962_v0 = vmul.f32 1.442695, %v2960_v53 }
 0xa15   : > { %v2955_v42 = vpop.permute.xlu1 %2954 }
 0xa16   : > { %v2959_v43 = vmax.f32 %v2951_v41, %v2955_v42  ;;  %2980 = vrot.lane.b32.xlu0 %v2958_v47, %s4095_s23 }
 0xa18   : > { %2970 = vrot.lane.b32.xlu1 %v2959_v43, %s4094_s22  ;;  %v2961_v1 = vsub.f32 %v2941_v5, %v2959_v43 }
 0xa1a   : > { %v2964_v3 = vmul.f32 1.442695, %v2961_v1 }
 0xa1c   : > { %2982 = vrot.lane.b32.xlu1 %v2959_v43, %s4095_s23 }
 0xa84   : > { %v2969_v44 = vpop.permute.xlu0 %2968 }
 0xa85   : > { %v2974_v45 = vsub.f32 %v2940_v31, %v2969_v44 }
 0xa87   : > { %v2976_v49 = vmul.f32 1.442695, %v2974_v45 }
 0xa88   : > { %v2981_v39 = vpop.permute.xlu0 %2980 }
 0xa89   : > { %4063 = vpow2.f32 %v2976_v49  ;;  %v2986_v51 = vsub.f32 %v2940_v31, %v2981_v39 }
 0xa8a   : > { %v2971_v52 = vpop.permute.xlu1 %2970 }
 0xa8b   : > { %v2988_v48 = vmul.f32 1.442695, %v2986_v51  ;;  %v2975_v50 = vsub.f32 %v2941_v5, %v2971_v52 }
 0xa8d   : > { %4065 = vpow2.f32 %v2988_v48  ;;  %v2978_v54 = vmul.f32 1.442695, %v2975_v50 }
 0xa8e   : > { %v2983_v55 = vpop.permute.xlu1 %2982 }
 0xa8f   : > { %4067 = vpow2.f32 %v2978_v54  ;;  %v2987_v56 = vsub.f32 %v2941_v5, %v2983_v55 }
 0xa91   : > { %v2990_v59 = vmul.f32 1.442695, %v2987_v56 }
 0xa93   : > { %v4064_v60 = vpop.eup %4063  ;;  %4069 = vpow2.f32 %v2990_v59 }
 0xa94   : > { %2994 = vrot.lane.b32.xlu0 %v4064_v60, %s4093_s21  ;;  %4071 = vpow2.f32 %v2962_v0 }
 0xa95   : > { %4073 = vpow2.f32 %v2964_v3 }
 0xa97   : > { %v4066_v62 = vpop.eup %4065 }
 0xa98   : > { %3004 = vrot.lane.b32.xlu0 %v4066_v62, %s4092_s20 }
 0xa99   : > { %v4068_v63 = vpop.eup %4067 }
 0xa9a   : > { %2996 = vrot.lane.b32.xlu1 %v4068_v63, %s4093_s21 }
 0xa9d   : > { %v4070_v7 = vpop.eup %4069 }
 0xa9e   : > { %3006 = vrot.lane.b32.xlu1 %v4070_v7, %s4092_s20  ;;  %v4072_v6 = vpop.eup %4071 }
 0xa9f   : > { %v4074_v36 = vpop.eup %4073 }
 0xb06   : > { %v2995_v4 = vpop.permute.xlu0 %2994 }
 0xb07   : > { %v3000_v8 = vadd.f32 %v4072_v6, %v2995_v4 }
 0xb0a   : > { %v3005_v9 = vpop.permute.xlu0 %3004 }
 0xb0b   : > { %v3010_v10 = vadd.f32 %v3005_v9, %v3000_v8 }
 0xb0c   : > { %v2997_v11 = vpop.permute.xlu1 %2996 }
 0xb0d   : > { %4075 = vrcp.f32 %v3010_v10  ;;  %v3001_v37 = vadd.f32 %v4074_v36, %v2997_v11 }
 0xb10   : > { %v3007_v12 = vpop.permute.xlu1 %3006 }
 0xb11   : > { %v3011_v13 = vadd.f32 %v3007_v12, %v3001_v37 }
 0xb13   : > { %4077 = vrcp.f32 %v3011_v13 }
 0xb17   : > { %v4076_v46 = vpop.eup %4075 }
 0xb18   : > { %3023 = vrot.lane.b32.xlu0 %v4076_v46, %s4094_s22  ;;  %v3016_v14 = vmul.f32 %v4076_v46, %v4072_v6 }
 0xb1a   : > { %3018 = vst.msk [vmem:[%s548_s0] sm:$0xff] %vm1563_vm8, %v3016_v14 }
 0xb1c   : > { %3042 = vrot.lane.b32.xlu0 %v4076_v46, %s4095_s23 }
 0xb1d   : > { %v4078_v2 = vpop.eup %4077 }
 0xb1e   : > { %3025 = vrot.lane.b32.xlu1 %v4078_v2, %s4094_s22  ;;  %v3017_v15 = vmul.f32 %v4078_v2, %v4074_v36 }
 0xb20   : > { %3020 = vst.msk [vmem:[%s548_s0 + $0x8] sm:$0x3f] %vm3019_vm15, %v3017_v15 }
 0xb22   : > { %3044 = vrot.lane.b32.xlu1 %v4078_v2, %s4095_s23 }
 0xb8a   : > { %v3024_v57 = vpop.permute.xlu0 %3023 }
 0xb8b   : > { %v3029_v16 = vmul.f32 %v4064_v60, %v3024_v57 }
 0xb8d   : > { %3033 = vrot.lane.b32.xlu0 %v3029_v16, %s4093_s21 }
 0xb8e   : > { %v3043_v18 = vpop.permute.xlu0 %3042 }
 0xb8f   : > { %v3048_v19 = vmul.f32 %v4066_v62, %v3043_v18 }
 0xb90   : > { %v3026_v20 = vpop.permute.xlu1 %3025 }
 0xb91   : > { %v3030_v21 = vmul.f32 %v4068_v63, %v3026_v20  ;;  %3052 = vrot.lane.b32.xlu0 %v3048_v19, %s4092_s20 }
 0xb93   : > { %3035 = vrot.lane.b32.xlu1 %v3030_v21, %s4093_s21 }
 0xb94   : > { %v3045_v22 = vpop.permute.xlu1 %3044 }
 0xb95   : > { %v3049_v23 = vmul.f32 %v4070_v7, %v3045_v22 }
 0xb97   : > { %3054 = vrot.lane.b32.xlu1 %v3049_v23, %s4092_s20 }
 0xbff   : > { %v3034_v24 = vpop.permute.xlu0 %3033 }
 0xc00   : > { %3462 = vst.msk [vmem:[%s548_s0 + $0x10] sm:$0xff] %vm1563_vm8, %v3034_v24 }
 0xc03   : > { %v3053_v25 = vpop.permute.xlu0 %3052 }
 0xc04   : > { %3464 = vst.msk [vmem:[%s548_s0 + $0x20] sm:$0xff] %vm1563_vm8, %v3053_v25 }
 0xc05   : > { %v3036_v26 = vpop.permute.xlu1 %3035 }
 0xc06   : > { %3463 = vst.msk [vmem:[%s548_s0 + $0x18] sm:$0x3f] %vm3019_vm15, %v3036_v26 }
 0xc09   : > { %v3055_v27 = vpop.permute.xlu1 %3054 }
 0xc0a   : > { %3465 = vst.msk [vmem:[%s548_s0 + $0x28] sm:$0x3f] %vm3019_vm15, %v3055_v27 }
 0xc0b PF: > { %s5824_s25 = sld [smem:[#allocation2_spill]] }
 0xc11   : > { %s27_s24 = sadd.s32 1, %s5824_s25  }
 0xc12   : > { %p24_p4 = scmp.ge.s32.totalorder %s27_s24, 4  }
 0xc14   :  { %26 = sbr.rel (!%p24_p4) target bundleno = 3 (0x3), region = 130 }

</bundles_post_ra>
